<compile_context>
chip_gen: v6e
topology: v6e:2x2x1
jax: 0.10.0
libtpu: 0.0.40
codegen_flags: <defaults>
</compile_context>

<pallas_src>
import jax
import jax.numpy as jnp
from jax.experimental import pallas as pl
from jax.experimental.pallas import tpu as pltpu

NUM_CLASSES = 53
CLASSES_PAD = 128            # lane-dense padded logits width (multiple of 128)
HIDDEN = 512                 # fc1 out-features (fixed by the module)
FC_TK_MAX = 4096             # fc1 K tile: 4096*256*bf16 = 2 MB per block
FC_TDH = 256                 # fc1 N tile: 512 -> 2 "parallel" blocks (dual-TC on v7x)
CONV_MAX_TILE = 2048         # conv GEMM row-tile upper bound
VMEM_LIMIT = 32 * 1024 * 1024


def _round_up(x, m):
    return (x + m - 1) // m * m


# ----------------------------------------------------------------------------
# Kernel 1: fused conv-as-GEMM + bias + relu + 2x2 maxpool.
#   x_ref : (4, tm, K)  bf16 im2col patches; axis 0 = pooling-window corner,
#                       rows of axis 1 = (n, pooled_i, pooled_j) row-major.
#   w_ref : (K, Cout)   bf16, K = 9*Cin
#   b_ref : (1, Cout)   f32
#   o_ref : (tm, Cout)  bf16 pooled output
# ----------------------------------------------------------------------------
def conv_gemm_relu_pool_kernel(x_ref, w_ref, b_ref, o_ref):
    g, tm, k = x_ref.shape
    x = x_ref[...].reshape(g * tm, k)                   # free: tm is a multiple of 16
    y = jnp.dot(x, w_ref[...], preferred_element_type=jnp.float32)
    y = jnp.maximum(y + b_ref[...], 0.0)                # bias + relu (f32)
    y = y.reshape(g, tm, y.shape[-1])                   # free split
    o_ref[...] = jnp.max(y, axis=0).astype(o_ref.dtype) # 2x2 maxpool on VPU


def conv_gemm_relu_pool(patches, w, b, cout):
    g, rows, k = patches.shape                          # g == 4 pooling corners
    tm = min(CONV_MAX_TILE, _round_up(rows, 16))        # multiple of 16 (bf16 packing)
    rows_p = _round_up(rows, tm)
    if rows_p != rows:
        patches = jnp.pad(patches, ((0, 0), (0, rows_p - rows), (0, 0)))
    out = pl.pallas_call(
        conv_gemm_relu_pool_kernel,
        out_shape=jax.ShapeDtypeStruct((rows_p, cout), jnp.bfloat16),
        grid=(rows_p // tm,),
        in_specs=[
            pl.BlockSpec((g, tm, k), lambda r: (0, r, 0)),
            pl.BlockSpec((k, cout), lambda r: (0, 0)),
            pl.BlockSpec((1, cout), lambda r: (0, 0)),
        ],
        out_specs=pl.BlockSpec((tm, cout), lambda r: (r, 0)),
        compiler_params=pltpu.CompilerParams(
            dimension_semantics=("parallel",),
            vmem_limit_bytes=VMEM_LIMIT),
    )(patches, w, b)
    return out[:rows] if rows_p != rows else out


# ----------------------------------------------------------------------------
# Kernel 2: fc1 + relu as an (N, K)-tiled GEMM.
#   grid = (HIDDEN // FC_TDH  [parallel],  f_pad // tk  [arbitrary, last])
#   x is fully VMEM-resident (constant index map); w1 streams in big K blocks.
#   f32 accumulator in VMEM scratch, init/finalize via pl.when.
# ----------------------------------------------------------------------------
def fc1_kernel(x_ref, w1_ref, b1_ref, h_ref, acc_ref):
    kk = pl.program_id(1)

    @pl.when(kk == 0)
    def _init():
        acc_ref[...] = jnp.zeros_like(acc_ref)

    tk = w1_ref.shape[0]
    start = pl.multiple_of(kk * tk, tk)
    acc_ref[...] += jnp.dot(x_ref[:, pl.ds(start, tk)], w1_ref[...],
                            preferred_element_type=jnp.float32)

    @pl.when(kk == pl.num_programs(1) - 1)
    def _finalize():
        h_ref[...] = jnp.maximum(acc_ref[...] + b1_ref[...], 0.0).astype(h_ref.dtype)


def fc1_forward(x, w1, b1):
    n, f_pad = x.shape
    dh = w1.shape[1]
    tk = min(FC_TK_MAX, f_pad)
    assert f_pad % tk == 0 and dh % FC_TDH == 0, (f_pad, tk, dh)
    k_blocks = f_pad // tk

    w1_spec = pl.BlockSpec((tk, FC_TDH), lambda j, k: (k, j))
    if k_blocks >= 3:
        # Deeper pipeline on the dominant weight stream (DMA-latency bound).
        w1_spec = pl.BlockSpec((tk, FC_TDH), lambda j, k: (k, j),
                               pipeline_mode=pl.Buffered(3))

    return pl.pallas_call(
        fc1_kernel,
        out_shape=jax.ShapeDtypeStruct((n, dh), jnp.bfloat16),
        grid=(dh // FC_TDH, k_blocks),
        in_specs=[
            # feat is tiny (<1 MB bf16 even at 224/batch-2): keep it resident.
            pl.BlockSpec((n, f_pad), lambda j, k: (0, 0)),
            w1_spec,
            pl.BlockSpec((1, FC_TDH), lambda j, k: (0, j)),
        ],
        out_specs=pl.BlockSpec((n, FC_TDH), lambda j, k: (0, j)),
        scratch_shapes=[pltpu.VMEM((n, FC_TDH), jnp.float32)],
        compiler_params=pltpu.CompilerParams(
            dimension_semantics=("parallel", "arbitrary"),
            vmem_limit_bytes=VMEM_LIMIT),
    )(x, w1, b1)


# ----------------------------------------------------------------------------
# Kernel 3: tiny fc2 (contracts over the full hidden dim, so it cannot live in
# fc1's finalize once the hidden dim is split across cores).
# ----------------------------------------------------------------------------
def fc2_kernel(h_ref, w2_ref, b2_ref, o_ref):
    o_ref[...] = (jnp.dot(h_ref[...], w2_ref[...],
                          preferred_element_type=jnp.float32)
                  + b2_ref[...]).astype(o_ref.dtype)


def fc2_forward(h, w2, b2):
    n, dh = h.shape
    cp = w2.shape[1]
    return pl.pallas_call(
        fc2_kernel,
        out_shape=jax.ShapeDtypeStruct((n, cp), jnp.float32),
        grid=(1,),
        in_specs=[
            pl.BlockSpec((n, dh), lambda i: (0, 0)),
            pl.BlockSpec((dh, cp), lambda i: (0, 0)),
            pl.BlockSpec((1, cp), lambda i: (0, 0)),
        ],
        out_specs=pl.BlockSpec((n, cp), lambda i: (0, 0)),
    )(h, w2, b2)


# ----------------------------------------------------------------------------
# Wrapper-side data prep (XLA): im2col with rows pre-grouped by pooling corner.
# The 4 groups are built directly from strided slices; the intermediate
# (N, H, W, 9*Cin) `cols` tensor is never materialized.
# ----------------------------------------------------------------------------
def im2col_pool_groups(x_nhwc):
    """(N, H, W, Cin) -> (4, N*(H/2)*(W/2), 9*Cin); axis 0 = 2x2 window corner."""
    n, h, w, cin = x_nhwc.shape
    hp, wp = h // 2, w // 2
    xp = jnp.pad(x_nhwc, ((0, 0), (1, 1), (1, 1), (0, 0)))
    groups = []
    for dy, dx in ((0, 0), (0, 1), (1, 0), (1, 1)):
        taps = [xp[:, dy + ky:dy + ky + 2 * hp:2, dx + kx:dx + kx + 2 * wp:2, :]
                for ky in range(3) for kx in range(3)]     # each (N, hp, wp, Cin)
        groups.append(jnp.concatenate(taps, axis=-1).reshape(n * hp * wp, 9 * cin))
    # TODO(synk): at the full 224x224 size, build these patches inside the conv
    # kernel from an NHWC row band with halo (manual DMA / shifted VMEM slices)
    # to remove the 9x HBM expansion entirely.
    return jnp.stack(groups, axis=0)


# ----------------------------------------------------------------------------
# Parameters.
# ----------------------------------------------------------------------------
def init_params(key, spatial):
    h4 = spatial // 4
    f = 64 * h4 * h4                                     # 64*56*56 at spatial=224
    ks = jax.random.split(key, 8)
    s = 0.05
    return {
        "w1": s * jax.random.normal(ks[0], (3, 3, 3, 32), jnp.float32),   # (ky,kx,Cin,Cout)
        "b1": s * jax.random.normal(ks[1], (32,), jnp.float32),
        "w2": s * jax.random.normal(ks[2], (3, 3, 32, 64), jnp.float32),
        "b2": s * jax.random.normal(ks[3], (64,), jnp.float32),
        "fw1": s * jax.random.normal(ks[4], (f, HIDDEN), jnp.float32),    # PyTorch (c,h,w) row order
        "fb1": s * jax.random.normal(ks[5], (HIDDEN,), jnp.float32),
        "fw2": s * jax.random.normal(ks[6], (HIDDEN, NUM_CLASSES), jnp.float32),
        "fb2": s * jax.random.normal(ks[7], (NUM_CLASSES,), jnp.float32),
    }


def prepare_params(p, spatial):
    """One-time repacking: conv weights -> (9*Cin, Cout) bf16; fc1 rows permuted
    from PyTorch's (c,h,w) flatten order to our (h,w,c) order and zero-padded to
    a multiple of the fc1 K tile; classes padded to 128 (lane-dense)."""
    h4 = spatial // 4
    f = 64 * h4 * h4
    tk = min(FC_TK_MAX, _round_up(f, 128))
    f_pad = _round_up(f, tk)
    kp = {
        "cw1": p["w1"].reshape(9 * 3, 32).astype(jnp.bfloat16),
        "cb1": p["b1"].reshape(1, 32).astype(jnp.float32),
        "cw2": p["w2"].reshape(9 * 32, 64).astype(jnp.bfloat16),
        "cb2": p["b2"].reshape(1, 64).astype(jnp.float32),
    }
    fw1 = p["fw1"].reshape(64, h4, h4, HIDDEN).transpose(1, 2, 0, 3).reshape(f, HIDDEN)
    fw1 = jnp.pad(fw1, ((0, f_pad - f), (0, 0)))         # zero rows -> exact
    kp["fw1"] = fw1.astype(jnp.bfloat16)
    kp["fb1"] = p["fb1"].reshape(1, HIDDEN).astype(jnp.float32)
    kp["fw2"] = jnp.pad(p["fw2"], ((0, 0), (0, CLASSES_PAD - NUM_CLASSES))
                        ).astype(jnp.bfloat16)
    kp["fb2"] = jnp.pad(p["fb2"], ((0, CLASSES_PAD - NUM_CLASSES),)
                        ).reshape(1, CLASSES_PAD).astype(jnp.float32)
    return kp


# ----------------------------------------------------------------------------
# Forward pass (matches PyTorch CardClassifier.forward).
# ----------------------------------------------------------------------------
@jax.jit
def card_classifier_forward(x_nchw, kp):
    x = jnp.transpose(x_nchw, (0, 2, 3, 1)).astype(jnp.bfloat16)   # NCHW -> NHWC
    n, h, w, _ = x.shape

    # conv1 + relu + pool
    y1 = conv_gemm_relu_pool(im2col_pool_groups(x), kp["cw1"], kp["cb1"], 32)
    h2, w2 = h // 2, w // 2
    y1 = y1.reshape(n, h2, w2, 32)

    # conv2 + relu + pool
    y2 = conv_gemm_relu_pool(im2col_pool_groups(y1), kp["cw2"], kp["cb2"], 64)
    h4, w4 = h2 // 2, w2 // 2

    # flatten in (h, w, c) order — fc1 rows were permuted at prep time to match
    feat = y2.reshape(n, h4 * w4 * 64)
    f = feat.shape[1]
    f_pad = kp["fw1"].shape[0]
    if f_pad != f:
        feat = jnp.pad(feat, ((0, 0), (0, f_pad - f)))

    hidden = fc1_forward(feat, kp["fw1"], kp["fb1"])      # relu(fc1) in Pallas
    logits = fc2_forward(hidden, kp["fw2"], kp["fb2"])    # fc2 in Pallas
    return logits[:, :NUM_CLASSES]


if __name__ == "__main__":
    SPATIAL = 16          # scaled down from the module's nominal 224 (see note)
    BATCH = 2
    key = jax.random.PRNGKey(0)
    k_x, k_p = jax.random.split(key)
    x = jax.random.normal(k_x, (BATCH, 3, SPATIAL, SPATIAL), jnp.float32)  # NCHW
    params = init_params(k_p, SPATIAL)
    kparams = prepare_params(params, SPATIAL)

    out = card_classifier_forward(x, kparams)
    out = jax.block_until_ready(out)
    assert out.shape == (BATCH, NUM_CLASSES), out.shape
    assert bool(jnp.isfinite(out).all())
    print("KERNEL_OK")
</pallas_src>

<mosaic_0001>
module attributes {stable_mosaic.version = 11 : i64} {
  func.func @conv_gemm_relu_pool_kernel(%arg0: i32, %arg1: memref<4x128x27xbf16, #tpu.memory_space<vmem>>, %arg2: memref<27x32xbf16, #tpu.memory_space<vmem>>, %arg3: memref<1x32xf32, #tpu.memory_space<vmem>>, %arg4: memref<128x32xbf16, #tpu.memory_space<vmem>>) attributes {dimension_semantics = [#tpu.dimension_semantics<parallel>], iteration_bounds = array<i64: 1>, scalar_prefetch = 0 : i64, scratch_operands = 0 : i64, tpu.core_type = #tpu.core_type<tc>, window_params = [{transform_indices = @transform_0, window_bounds = array<i64: 4, 128, 27>}, {pipeline_mode = #tpu.pipeline_mode<synchronous>, transform_indices = @transform_1, window_bounds = array<i64: 27, 32>}, {pipeline_mode = #tpu.pipeline_mode<synchronous>, transform_indices = @transform_2, window_bounds = array<i64: 1, 32>}, {transform_indices = @transform_3, window_bounds = array<i64: 128, 32>}]} {
    %c0 = arith.constant 0 : index
    %c0_0 = arith.constant 0 : index
    %c0_1 = arith.constant 0 : index
    %0 = vector.load %arg1[%c0, %c0_0, %c0_1] : memref<4x128x27xbf16, #tpu.memory_space<vmem>>, vector<4x128x27xbf16>
    %1 = vector.shape_cast %0 : vector<4x128x27xbf16> to vector<512x27xbf16>
    %c0_2 = arith.constant 0 : index
    %c0_3 = arith.constant 0 : index
    %2 = vector.load %arg2[%c0_2, %c0_3] : memref<27x32xbf16, #tpu.memory_space<vmem>>, vector<27x32xbf16>
    %cst = arith.constant dense<0.000000e+00> : vector<512x32xf32>
    %3 = tpu.matmul %1, %2, %cst {dimension_numbers = #tpu.dot_dimension_numbers<[1], [0], [0], [1], [0, 0, 1, 1], [], []>} : vector<512x27xbf16>, vector<27x32xbf16>, vector<512x32xf32> -> vector<512x32xf32>
    %c0_4 = arith.constant 0 : index
    %c0_5 = arith.constant 0 : index
    %4 = vector.load %arg3[%c0_4, %c0_5] : memref<1x32xf32, #tpu.memory_space<vmem>>, vector<1x32xf32>
    %5 = vector.broadcast %4 : vector<1x32xf32> to vector<512x32xf32>
    %6 = arith.addf %3, %5 : vector<512x32xf32>
    %cst_6 = arith.constant 0.000000e+00 : f32
    %7 = vector.broadcast %cst_6 : f32 to vector<512x32xf32>
    %8 = arith.maximumf %6, %7 : vector<512x32xf32>
    %9 = vector.shape_cast %8 : vector<512x32xf32> to vector<4x128x32xf32>
    %cst_7 = arith.constant dense<0xFF800000> : vector<128x32xf32>
    %10 = vector.multi_reduction <maximumf>, %9, %cst_7 [0] : vector<4x128x32xf32> to vector<128x32xf32>
    %11 = arith.truncf %10 : vector<128x32xf32> to vector<128x32xbf16>
    %c0_8 = arith.constant 0 : index
    %c0_9 = arith.constant 0 : index
    %12 = vector.load %arg4[%c0_8, %c0_9] : memref<128x32xbf16, #tpu.memory_space<vmem>>, vector<128x32xbf16>
    tpu.vector_store %arg4[%c0_8, %c0_9], %11 {strides = array<i32>} : memref<128x32xbf16, #tpu.memory_space<vmem>>, vector<128x32xbf16>,
    return
  }
  func.func @transform_0(%arg0: i32) -> (i32, i32, i32) {
    %c0_i32 = arith.constant 0 : i32
    %c0_i32_0 = arith.constant 0 : i32
    %c0_i32_1 = arith.constant 0 : i32
    return %c0_i32, %arg0, %c0_i32_0 : i32, i32, i32
  }
  func.func @transform_1(%arg0: i32) -> (i32, i32) {
    %c0_i32 = arith.constant 0 : i32
    %c0_i32_0 = arith.constant 0 : i32
    %c0_i32_1 = arith.constant 0 : i32
    return %c0_i32, %c0_i32_0 : i32, i32
  }
  func.func @transform_2(%arg0: i32) -> (i32, i32) {
    %c0_i32 = arith.constant 0 : i32
    %c0_i32_0 = arith.constant 0 : i32
    %c0_i32_1 = arith.constant 0 : i32
    return %c0_i32, %c0_i32_0 : i32, i32
  }
  func.func @transform_3(%arg0: i32) -> (i32, i32) {
    %c0_i32 = arith.constant 0 : i32
    %c0_i32_0 = arith.constant 0 : i32
    return %arg0, %c0_i32 : i32, i32
  }
}

module attributes {stable_mosaic.version = 11 : i64} {
  func.func @conv_gemm_relu_pool_kernel(%arg0: i32, %arg1: memref<4x32x288xbf16, #tpu.memory_space<vmem>>, %arg2: memref<288x64xbf16, #tpu.memory_space<vmem>>, %arg3: memref<1x64xf32, #tpu.memory_space<vmem>>, %arg4: memref<32x64xbf16, #tpu.memory_space<vmem>>) attributes {dimension_semantics = [#tpu.dimension_semantics<parallel>], iteration_bounds = array<i64: 1>, scalar_prefetch = 0 : i64, scratch_operands = 0 : i64, tpu.core_type = #tpu.core_type<tc>, window_params = [{transform_indices = @transform_0, window_bounds = array<i64: 4, 32, 288>}, {pipeline_mode = #tpu.pipeline_mode<synchronous>, transform_indices = @transform_1, window_bounds = array<i64: 288, 64>}, {pipeline_mode = #tpu.pipeline_mode<synchronous>, transform_indices = @transform_2, window_bounds = array<i64: 1, 64>}, {transform_indices = @transform_3, window_bounds = array<i64: 32, 64>}]} {
    %c0 = arith.constant 0 : index
    %c0_0 = arith.constant 0 : index
    %c0_1 = arith.constant 0 : index
    %0 = vector.load %arg1[%c0, %c0_0, %c0_1] : memref<4x32x288xbf16, #tpu.memory_space<vmem>>, vector<4x32x288xbf16>
    %1 = vector.shape_cast %0 : vector<4x32x288xbf16> to vector<128x288xbf16>
    %c0_2 = arith.constant 0 : index
    %c0_3 = arith.constant 0 : index
    %2 = vector.load %arg2[%c0_2, %c0_3] : memref<288x64xbf16, #tpu.memory_space<vmem>>, vector<288x64xbf16>
    %cst = arith.constant dense<0.000000e+00> : vector<128x64xf32>
    %3 = tpu.matmul %1, %2, %cst {dimension_numbers = #tpu.dot_dimension_numbers<[1], [0], [0], [1], [0, 0, 1, 1], [], []>} : vector<128x288xbf16>, vector<288x64xbf16>, vector<128x64xf32> -> vector<128x64xf32>
    %c0_4 = arith.constant 0 : index
    %c0_5 = arith.constant 0 : index
    %4 = vector.load %arg3[%c0_4, %c0_5] : memref<1x64xf32, #tpu.memory_space<vmem>>, vector<1x64xf32>
    %5 = vector.broadcast %4 : vector<1x64xf32> to vector<128x64xf32>
    %6 = arith.addf %3, %5 : vector<128x64xf32>
    %cst_6 = arith.constant 0.000000e+00 : f32
    %7 = vector.broadcast %cst_6 : f32 to vector<128x64xf32>
    %8 = arith.maximumf %6, %7 : vector<128x64xf32>
    %9 = vector.shape_cast %8 : vector<128x64xf32> to vector<4x32x64xf32>
    %cst_7 = arith.constant dense<0xFF800000> : vector<32x64xf32>
    %10 = vector.multi_reduction <maximumf>, %9, %cst_7 [0] : vector<4x32x64xf32> to vector<32x64xf32>
    %11 = arith.truncf %10 : vector<32x64xf32> to vector<32x64xbf16>
    %c0_8 = arith.constant 0 : index
    %c0_9 = arith.constant 0 : index
    %12 = vector.load %arg4[%c0_8, %c0_9] : memref<32x64xbf16, #tpu.memory_space<vmem>>, vector<32x64xbf16>
    tpu.vector_store %arg4[%c0_8, %c0_9], %11 {strides = array<i32>} : memref<32x64xbf16, #tpu.memory_space<vmem>>, vector<32x64xbf16>,
    return
  }
  func.func @transform_0(%arg0: i32) -> (i32, i32, i32) {
    %c0_i32 = arith.constant 0 : i32
    %c0_i32_0 = arith.constant 0 : i32
    %c0_i32_1 = arith.constant 0 : i32
    return %c0_i32, %arg0, %c0_i32_0 : i32, i32, i32
  }
  func.func @transform_1(%arg0: i32) -> (i32, i32) {
    %c0_i32 = arith.constant 0 : i32
    %c0_i32_0 = arith.constant 0 : i32
    %c0_i32_1 = arith.constant 0 : i32
    return %c0_i32, %c0_i32_0 : i32, i32
  }
  func.func @transform_2(%arg0: i32) -> (i32, i32) {
    %c0_i32 = arith.constant 0 : i32
    %c0_i32_0 = arith.constant 0 : i32
    %c0_i32_1 = arith.constant 0 : i32
    return %c0_i32, %c0_i32_0 : i32, i32
  }
  func.func @transform_3(%arg0: i32) -> (i32, i32) {
    %c0_i32 = arith.constant 0 : i32
    %c0_i32_0 = arith.constant 0 : i32
    return %arg0, %c0_i32 : i32, i32
  }
}

module attributes {stable_mosaic.version = 11 : i64} {
  func.func @fc1_kernel(%arg0: i32, %arg1: i32, %arg2: memref<2x1024xbf16, #tpu.memory_space<vmem>>, %arg3: memref<1024x256xbf16, #tpu.memory_space<vmem>>, %arg4: memref<1x256xf32, #tpu.memory_space<vmem>>, %arg5: memref<2x256xbf16, #tpu.memory_space<vmem>>, %arg6: memref<2x256xf32, #tpu.memory_space<vmem>>) attributes {dimension_semantics = [#tpu.dimension_semantics<parallel>, #tpu.dimension_semantics<arbitrary>], iteration_bounds = array<i64: 2, 1>, scalar_prefetch = 0 : i64, scratch_operands = 1 : i64, tpu.core_type = #tpu.core_type<tc>, window_params = [{pipeline_mode = #tpu.pipeline_mode<synchronous>, transform_indices = @transform_0, window_bounds = array<i64: 2, 1024>}, {transform_indices = @transform_1, window_bounds = array<i64: 1024, 256>}, {transform_indices = @transform_2, window_bounds = array<i64: 1, 256>}, {transform_indices = @transform_3, window_bounds = array<i64: 2, 256>}]} {
    %c0_i32 = arith.constant 0 : i32
    %0 = arith.cmpi eq, %arg1, %c0_i32 : i32
    %1 = arith.extui %0 : i1 to i32
    %c0_i32_0 = arith.constant 0 : i32
    %2 = arith.cmpi ne, %1, %c0_i32_0 : i32
    scf.if %2 {
      %cst_9 = arith.constant 0.000000e+00 : f32
      %15 = vector.broadcast %cst_9 : f32 to vector<2x256xf32>
      %c0_10 = arith.constant 0 : index
      %c0_11 = arith.constant 0 : index
      %16 = vector.load %arg6[%c0_10, %c0_11] : memref<2x256xf32, #tpu.memory_space<vmem>>, vector<2x256xf32>
      tpu.vector_store %arg6[%c0_10, %c0_11], %15 {strides = array<i32>} : memref<2x256xf32, #tpu.memory_space<vmem>>, vector<2x256xf32>,
    } else {
    }
    %c1024_i32 = arith.constant 1024 : i32
    %3 = arith.muli %arg1, %c1024_i32 : i32
    %4 = tpu.assume_multiple %3, 1024 : i32
    %c0 = arith.constant 0 : index
    %c0_1 = arith.constant 0 : index
    %5 = vector.load %arg6[%c0, %c0_1] : memref<2x256xf32, #tpu.memory_space<vmem>>, vector<2x256xf32>
    %c0_2 = arith.constant 0 : index
    %6 = arith.index_cast %4 : i32 to index
    %7 = vector.load %arg2[%c0_2, %6] : memref<2x1024xbf16, #tpu.memory_space<vmem>>, vector<2x1024xbf16>
    %c0_3 = arith.constant 0 : index
    %c0_4 = arith.constant 0 : index
    %8 = vector.load %arg3[%c0_3, %c0_4] : memref<1024x256xbf16, #tpu.memory_space<vmem>>, vector<1024x256xbf16>
    %cst = arith.constant dense<0.000000e+00> : vector<2x256xf32>
    %9 = tpu.matmul %7, %8, %cst {dimension_numbers = #tpu.dot_dimension_numbers<[1], [0], [0], [1], [0, 0, 1, 1], [], []>} : vector<2x1024xbf16>, vector<1024x256xbf16>, vector<2x256xf32> -> vector<2x256xf32>
    %10 = arith.addf %5, %9 : vector<2x256xf32>
    %c0_5 = arith.constant 0 : index
    %c0_6 = arith.constant 0 : index
    %11 = vector.load %arg6[%c0_5, %c0_6] : memref<2x256xf32, #tpu.memory_space<vmem>>, vector<2x256xf32>
    tpu.vector_store %arg6[%c0_5, %c0_6], %10 {strides = array<i32>} : memref<2x256xf32, #tpu.memory_space<vmem>>, vector<2x256xf32>,
    %c0_i32_7 = arith.constant 0 : i32
    %12 = arith.cmpi eq, %arg1, %c0_i32_7 : i32
    %13 = arith.extui %12 : i1 to i32
    %c0_i32_8 = arith.constant 0 : i32
    %14 = arith.cmpi ne, %13, %c0_i32_8 : i32
    scf.if %14 {
      %c0_9 = arith.constant 0 : index
      %c0_10 = arith.constant 0 : index
      %15 = vector.load %arg6[%c0_9, %c0_10] : memref<2x256xf32, #tpu.memory_space<vmem>>, vector<2x256xf32>
      %c0_11 = arith.constant 0 : index
      %c0_12 = arith.constant 0 : index
      %16 = vector.load %arg4[%c0_11, %c0_12] : memref<1x256xf32, #tpu.memory_space<vmem>>, vector<1x256xf32>
      %17 = vector.broadcast %16 : vector<1x256xf32> to vector<2x256xf32>
      %18 = arith.addf %15, %17 : vector<2x256xf32>
      %cst_13 = arith.constant 0.000000e+00 : f32
      %19 = vector.broadcast %cst_13 : f32 to vector<2x256xf32>
      %20 = arith.maximumf %18, %19 : vector<2x256xf32>
      %21 = arith.truncf %20 : vector<2x256xf32> to vector<2x256xbf16>
      %c0_14 = arith.constant 0 : index
      %c0_15 = arith.constant 0 : index
      %22 = vector.load %arg5[%c0_14, %c0_15] : memref<2x256xbf16, #tpu.memory_space<vmem>>, vector<2x256xbf16>
      tpu.vector_store %arg5[%c0_14, %c0_15], %21 {strides = array<i32>} : memref<2x256xbf16, #tpu.memory_space<vmem>>, vector<2x256xbf16>,
    } else {
    }
    return
  }
  func.func @transform_0(%arg0: i32, %arg1: i32) -> (i32, i32) {
    %c0_i32 = arith.constant 0 : i32
    %c0_i32_0 = arith.constant 0 : i32
    %c0_i32_1 = arith.constant 0 : i32
    return %c0_i32, %c0_i32_0 : i32, i32
  }
  func.func @transform_1(%arg0: i32, %arg1: i32) -> (i32, i32) {
    %c0_i32 = arith.constant 0 : i32
    return %arg1, %arg0 : i32, i32
  }
  func.func @transform_2(%arg0: i32, %arg1: i32) -> (i32, i32) {
    %c0_i32 = arith.constant 0 : i32
    %c0_i32_0 = arith.constant 0 : i32
    return %c0_i32, %arg0 : i32, i32
  }
  func.func @transform_3(%arg0: i32, %arg1: i32) -> (i32, i32) {
    %c0_i32 = arith.constant 0 : i32
    %c0_i32_0 = arith.constant 0 : i32
    return %c0_i32, %arg0 : i32, i32
  }
}

module attributes {stable_mosaic.version = 11 : i64} {
  func.func @fc2_kernel(%arg0: i32, %arg1: memref<2x512xbf16, #tpu.memory_space<vmem>>, %arg2: memref<512x128xbf16, #tpu.memory_space<vmem>>, %arg3: memref<1x128xf32, #tpu.memory_space<vmem>>, %arg4: memref<2x128xf32, #tpu.memory_space<vmem>>) attributes {dimension_semantics = [#tpu.dimension_semantics<arbitrary>], iteration_bounds = array<i64: 1>, scalar_prefetch = 0 : i64, scratch_operands = 0 : i64, tpu.core_type = #tpu.core_type<tc>, window_params = [{pipeline_mode = #tpu.pipeline_mode<synchronous>, transform_indices = @transform_0, window_bounds = array<i64: 2, 512>}, {pipeline_mode = #tpu.pipeline_mode<synchronous>, transform_indices = @transform_1, window_bounds = array<i64: 512, 128>}, {pipeline_mode = #tpu.pipeline_mode<synchronous>, transform_indices = @transform_2, window_bounds = array<i64: 1, 128>}, {pipeline_mode = #tpu.pipeline_mode<synchronous>, transform_indices = @transform_3, window_bounds = array<i64: 2, 128>}]} {
    %c0 = arith.constant 0 : index
    %c0_0 = arith.constant 0 : index
    %0 = vector.load %arg1[%c0, %c0_0] : memref<2x512xbf16, #tpu.memory_space<vmem>>, vector<2x512xbf16>
    %c0_1 = arith.constant 0 : index
    %c0_2 = arith.constant 0 : index
    %1 = vector.load %arg2[%c0_1, %c0_2] : memref<512x128xbf16, #tpu.memory_space<vmem>>, vector<512x128xbf16>
    %cst = arith.constant dense<0.000000e+00> : vector<2x128xf32>
    %2 = tpu.matmul %0, %1, %cst {dimension_numbers = #tpu.dot_dimension_numbers<[1], [0], [0], [1], [0, 0, 1, 1], [], []>} : vector<2x512xbf16>, vector<512x128xbf16>, vector<2x128xf32> -> vector<2x128xf32>
    %c0_3 = arith.constant 0 : index
    %c0_4 = arith.constant 0 : index
    %3 = vector.load %arg3[%c0_3, %c0_4] : memref<1x128xf32, #tpu.memory_space<vmem>>, vector<1x128xf32>
    %4 = vector.broadcast %3 : vector<1x128xf32> to vector<2x128xf32>
    %5 = arith.addf %2, %4 : vector<2x128xf32>
    %c0_5 = arith.constant 0 : index
    %c0_6 = arith.constant 0 : index
    %6 = vector.load %arg4[%c0_5, %c0_6] : memref<2x128xf32, #tpu.memory_space<vmem>>, vector<2x128xf32>
    tpu.vector_store %arg4[%c0_5, %c0_6], %5 {strides = array<i32>} : memref<2x128xf32, #tpu.memory_space<vmem>>, vector<2x128xf32>,
    return
  }
  func.func @transform_0(%arg0: i32) -> (i32, i32) {
    %c0_i32 = arith.constant 0 : i32
    %c0_i32_0 = arith.constant 0 : i32
    %c0_i32_1 = arith.constant 0 : i32
    return %c0_i32, %c0_i32_0 : i32, i32
  }
  func.func @transform_1(%arg0: i32) -> (i32, i32) {
    %c0_i32 = arith.constant 0 : i32
    %c0_i32_0 = arith.constant 0 : i32
    %c0_i32_1 = arith.constant 0 : i32
    return %c0_i32, %c0_i32_0 : i32, i32
  }
  func.func @transform_2(%arg0: i32) -> (i32, i32) {
    %c0_i32 = arith.constant 0 : i32
    %c0_i32_0 = arith.constant 0 : i32
    %c0_i32_1 = arith.constant 0 : i32
    return %c0_i32, %c0_i32_0 : i32, i32
  }
  func.func @transform_3(%arg0: i32) -> (i32, i32) {
    %c0_i32 = arith.constant 0 : i32
    %c0_i32_0 = arith.constant 0 : i32
    %c0_i32_1 = arith.constant 0 : i32
    return %c0_i32, %c0_i32_0 : i32, i32
  }
}

</mosaic_0001>

<bundles_post_ra>
// kernel: card_classifier_forward.4
= control target key start
LH: loop header
LB: loop body
LE: loop exit
PB: predicated region body
PF: predicated region fallthrough
CT: control target
= control target key end

     0   :  { %vm358_vm0 = vcmask 1044480   ;;  %vm359_vm1 = vcmask 1045504   ;;  %v1156_v1 = vmov 65535   ;;  %vm261_vm2 = vcmask 220160   ;;  %s1610_s1 = inlined_call_operand.vmem [shape: bf16[27,32], index: 1, kind: input, shape index: {}]   ;;  %s1611_s0 = inlined_call_operand.vmem [shape: bf16[4,128,27], index: 0, kind: input, shape index: {}]   ;;  %s1612_s2 = inlined_call_operand.vmem [shape: f32[1,32], index: 2, kind: input, shape index: {}]   ;;  %s1613_s3 = inlined_call_operand.vmem [shape: bf16[128,32], index: 3, kind: output, shape index: {}]  }
   0x1   :  { %v1122_v0 = vld [vmem:[%s1610_s1 + $0x8] sm:$0x3f]   ;;  %v360_v2 = vsel %vm358_vm0, 4294967295, %v1156_v1  ;;  %v1124_v4 = vld [vmem:[%s1611_s0] sm:$0xff]   ;;  %v1128_v10 = vld [vmem:[%s1611_s0 + $0x10] sm:$0xff]   ;;  %vm718_vm3 = vcmask 261120  }
   0x2   :  { %v361_v3 = vsel %vm359_vm1, %v360_v2, 0  ;;  %v1123_v6 = vld [vmem:[%s1610_s1] sm:$0xff]   ;;  %1053 = vmatprep.mubr.msk.bf16.mxu0 %vm261_vm2, %v1124_v4  ;;  %v1126_v8 = vld [vmem:[%s1611_s0 + $0x8] sm:$0xff]   ;;  %v1129_v11 = vld [vmem:[%s1611_s0 + $0x90] sm:$0xff]   ;;  %vm895_vm4 = vcmask 257024  }
   0x3   :  { %v363_v5 = vand.u32 %v1122_v0, %v361_v3  ;;  %v1125_v7 = vld [vmem:[%s1611_s0 + $0x80] sm:$0xff]   ;;  %v1127_v9 = vld [vmem:[%s1611_s0 + $0x88] sm:$0xff]   ;;  %v1130_v12 = vld [vmem:[%s1611_s0 + $0x18] sm:$0xff]  }
   0x4   :  { %1085 = vmatprep.mubr.msk.bf16.mxu1 %vm261_vm2, %v1125_v7  ;;  %v1131_v13 = vld [vmem:[%s1611_s0 + $0x98] sm:$0xff]   ;;  %v1132_v14 = vld [vmem:[%s1611_s0 + $0x20] sm:$0xff]   ;;  %v1134_v16 = vld [vmem:[%s1611_s0 + $0x28] sm:$0xff]  }
   0x5   :  { %1049 = vmatprep.subr.bf16.mxu0 %v363_v5  ;;  %1117 = vmatprep.subr.bf16.mxu1 %v363_v5  ;;  %v1133_v15 = vld [vmem:[%s1611_s0 + $0xa0] sm:$0xff]   ;;  %v1135_v17 = vld [vmem:[%s1611_s0 + $0xa8] sm:$0xff]   ;;  %v1136_v18 = vld [vmem:[%s1611_s0 + $0x30] sm:$0xff]  }
   0x6   :  { %1050 = vmatpush3.bf16.msra.mxu0 %v363_v5  ;;  %1119 = vmatpush3.bf16.msra.mxu1 %v363_v5  ;;  %v1137_v19 = vld [vmem:[%s1611_s0 + $0xb0] sm:$0xff]   ;;  %v1138_v20 = vld [vmem:[%s1611_s0 + $0x38] sm:$0xff]   ;;  %v1140_v22 = vld [vmem:[%s1611_s0 + $0x40] sm:$0xff]  }
   0x7   :  { %1051 = vmatprep.subr.bf16.mxu0 %v1123_v6  ;;  %1118 = vmatprep.subr.bf16.mxu1 %v1123_v6  ;;  %v1139_v21 = vld [vmem:[%s1611_s0 + $0xb8] sm:$0xff]   ;;  %v1141_v23 = vld [vmem:[%s1611_s0 + $0xc0] sm:$0xff]   ;;  %v1142_v24 = vld [vmem:[%s1611_s0 + $0x48] sm:$0xff]  }
   0x8   :  { %v1143_v25 = vld [vmem:[%s1611_s0 + $0xc8] sm:$0xff]   ;;  %v1144_v26 = vld [vmem:[%s1611_s0 + $0x50] sm:$0xff]   ;;  %v1146_v28 = vld [vmem:[%s1611_s0 + $0x58] sm:$0xff]  }
   0x9   :  { %v1145_v27 = vld [vmem:[%s1611_s0 + $0xd0] sm:$0xff]   ;;  %v1147_v29 = vld [vmem:[%s1611_s0 + $0xd8] sm:$0xff]   ;;  %v1148_v30 = vld [vmem:[%s1611_s0 + $0x60] sm:$0xff]  }
   0xa   :  { %1052 = vmatpush3.bf16.msra.mxu0 %v1123_v6  ;;  %1120 = vmatpush3.bf16.msra.mxu1 %v1123_v6  ;;  %v1149_v31 = vld [vmem:[%s1611_s0 + $0xe0] sm:$0xff]   ;;  %v1150_v32 = vld [vmem:[%s1611_s0 + $0x68] sm:$0xff]   ;;  %v1152_v34 = vld [vmem:[%s1611_s0 + $0x70] sm:$0xff]  }
   0xb   :  { %v1151_v33 = vld [vmem:[%s1611_s0 + $0xe8] sm:$0xff]   ;;  %v1153_v35 = vld [vmem:[%s1611_s0 + $0xf0] sm:$0xff]   ;;  %v1154_v36 = vld [vmem:[%s1611_s0 + $0x78] sm:$0xff]  }
   0xc   :  { %v1155_v37 = vld [vmem:[%s1611_s0 + $0xf8] sm:$0xff]   ;;  %v1314_v44 = vld [vmem:[%s1612_s2] ss:$0 sm:$0xff] }
   0xd   :  { %1054 = vmatmul.mubr.msk.bf16.vlgmr.msra.gmra.mxu0 %vm261_vm2, %v1126_v8  ;;  %1086 = vmatmul.mubr.msk.bf16.vlgmr.msra.gmra.mxu1 %vm261_vm2, %v1127_v9 }
   0xe   :  { %1057 = vmatprep.mubr.msk.bf16.mxu0 %vm261_vm2, %v1128_v10  ;;  %1089 = vmatprep.mubr.msk.bf16.mxu1 %vm261_vm2, %v1129_v11 }
  0x15   :  { %1058 = vmatmul.mubr.msk.bf16.gmra.mxu0 %vm261_vm2, %v1130_v12  ;;  %1090 = vmatmul.mubr.msk.bf16.gmra.mxu1 %vm261_vm2, %v1131_v13 }
  0x16   :  { %1061 = vmatprep.mubr.msk.bf16.mxu0 %vm261_vm2, %v1132_v14  ;;  %1093 = vmatprep.mubr.msk.bf16.mxu1 %vm261_vm2, %v1133_v15 }
  0x1d   :  { %1062 = vmatmul.mubr.msk.bf16.gmra.mxu0 %vm261_vm2, %v1134_v16  ;;  %1094 = vmatmul.mubr.msk.bf16.gmra.mxu1 %vm261_vm2, %v1135_v17 }
  0x1e   :  { %1065 = vmatprep.mubr.msk.bf16.mxu0 %vm261_vm2, %v1136_v18  ;;  %1097 = vmatprep.mubr.msk.bf16.mxu1 %vm261_vm2, %v1137_v19 }
  0x25   :  { %1066 = vmatmul.mubr.msk.bf16.gmra.mxu0 %vm261_vm2, %v1138_v20  ;;  %1098 = vmatmul.mubr.msk.bf16.gmra.mxu1 %vm261_vm2, %v1139_v21 }
  0x26   :  { %1069 = vmatprep.mubr.msk.bf16.mxu0 %vm261_vm2, %v1140_v22  ;;  %1101 = vmatprep.mubr.msk.bf16.mxu1 %vm261_vm2, %v1141_v23 }
  0x2d   :  { %1070 = vmatmul.mubr.msk.bf16.gmra.mxu0 %vm261_vm2, %v1142_v24  ;;  %1102 = vmatmul.mubr.msk.bf16.gmra.mxu1 %vm261_vm2, %v1143_v25 }
  0x2e   :  { %1073 = vmatprep.mubr.msk.bf16.mxu0 %vm261_vm2, %v1144_v26  ;;  %1105 = vmatprep.mubr.msk.bf16.mxu1 %vm261_vm2, %v1145_v27 }
  0x35   :  { %1074 = vmatmul.mubr.msk.bf16.gmra.mxu0 %vm261_vm2, %v1146_v28  ;;  %1106 = vmatmul.mubr.msk.bf16.gmra.mxu1 %vm261_vm2, %v1147_v29 }
  0x36   :  { %1077 = vmatprep.mubr.msk.bf16.mxu0 %vm261_vm2, %v1148_v30  ;;  %1109 = vmatprep.mubr.msk.bf16.mxu1 %vm261_vm2, %v1149_v31 }
  0x3d   :  { %1078 = vmatmul.mubr.msk.bf16.gmra.mxu0 %vm261_vm2, %v1150_v32  ;;  %1110 = vmatmul.mubr.msk.bf16.gmra.mxu1 %vm261_vm2, %v1151_v33 }
  0x3e   :  { %1081 = vmatprep.mubr.msk.bf16.mxu0 %vm261_vm2, %v1152_v34  ;;  %1113 = vmatprep.mubr.msk.bf16.mxu1 %vm261_vm2, %v1153_v35 }
  0x45   :  { %1082 = vmatmul.mubr.msk.bf16.gmra.mxu0 %vm261_vm2, %v1154_v36  ;;  %1114 = vmatmul.mubr.msk.bf16.gmra.mxu1 %vm261_vm2, %v1155_v37 }
  0xcd   :  { %v1055_v38 = vpop.f32.mrf.mxu0  ;;  %v1087_v39 = vpop.f32.mrf.mxu1 }
  0xce   :  { %v408_v49 = vadd.f32 %v1055_v38, %v1314_v44  ;;  %v536_v50 = vadd.f32 %v1087_v39, %v1314_v44 }
  0xcf   :  { %v399_v40 = vpop.f32.mrf.mxu0  ;;  %v527_v41 = vpop.f32.mrf.mxu1 }
  0xd0   :  { %v400_v53 = vadd.f32 %v1314_v44, %v399_v40  ;;  %v528_v54 = vadd.f32 %v1314_v44, %v527_v41  ;;  %v656_v59 = vmax.f32 %v408_v49, 0.0  ;;  %v688_v60 = vmax.f32 %v536_v50, 0.0 }
  0xd1   :  { %v1056_v42 = vpop.f32.mrf.mxu0  ;;  %v1088_v43 = vpop.f32.mrf.mxu1 }
  0xd2   :  { %v411_v55 = vadd.f32 %v1056_v42, %v1314_v44  ;;  %v539_v56 = vadd.f32 %v1088_v43, %v1314_v44  ;;  %v654_v3 = vmax.f32 %v400_v53, 0.0  ;;  %v686_v4 = vmax.f32 %v528_v54, 0.0 }
  0xd3   :  { %v402_v45 = vpop.f32.mrf.mxu0  ;;  %v530_v46 = vpop.f32.mrf.mxu1  ;;  %v1329_v11 = vsel %vm718_vm3, %v656_v59, -inf  ;;  %v1332_v12 = vsel %vm718_vm3, %v688_v60, -inf }
  0xd4   :  { %v403_v61 = vadd.f32 %v1314_v44, %v402_v45  ;;  %v531_v62 = vadd.f32 %v1314_v44, %v530_v46  ;;  %v657_v6 = vmax.f32 %v411_v55, 0.0  ;;  %v689_v7 = vmax.f32 %v539_v56, 0.0 }
  0xd5   :  { %v1059_v47 = vpop.f32.mrf.mxu0  ;;  %v1091_v48 = vpop.f32.mrf.mxu1  ;;  %v1336_v20 = vsel %vm718_vm3, %v654_v3, -inf  ;;  %v1339_v21 = vsel %vm718_vm3, %v686_v4, -inf }
  0xd6   :  { %v424_v63 = vadd.f32 %v1059_v47, %v1314_v44  ;;  %v552_v0 = vadd.f32 %v1091_v48, %v1314_v44  ;;  %v655_v13 = vmax.f32 %v403_v61, 0.0  ;;  %v687_v14 = vmax.f32 %v531_v62, 0.0 }
  0xd7   :  { %v415_v51 = vpop.f32.mrf.mxu0  ;;  %v543_v52 = vpop.f32.mrf.mxu1  ;;  %v1343_v24 = vsel %vm718_vm3, %v657_v6, -inf  ;;  %v1346_v25 = vsel %vm718_vm3, %v689_v7, -inf }
  0xd8   :  { %v416_v5 = vadd.f32 %v1314_v44, %v415_v51  ;;  %v544_v8 = vadd.f32 %v1314_v44, %v543_v52  ;;  %v660_v15 = vmax.f32 %v424_v63, 0.0  ;;  %v692_v16 = vmax.f32 %v552_v0, 0.0 }
  0xd9   :  { %v1060_v57 = vpop.f32.mrf.mxu0  ;;  %v1092_v58 = vpop.f32.mrf.mxu1  ;;  %v1350_v30 = vsel %vm718_vm3, %v655_v13, -inf  ;;  %v1356_v34 = vsel %vm718_vm3, %v687_v14, -inf }
  0xda   :  { %v427_v17 = vadd.f32 %v1060_v57, %v1314_v44  ;;  %v658_v22 = vmax.f32 %v416_v5, 0.0  ;;  %v555_v23 = vadd.f32 %v1092_v58, %v1314_v44  ;;  %v690_v26 = vmax.f32 %v544_v8, 0.0 }
  0xdb   :  { %v418_v1 = vpop.f32.mrf.mxu0  ;;  %v546_v2 = vpop.f32.mrf.mxu1  ;;  %v1359_v35 = vsel %vm718_vm3, %v660_v15, -inf  ;;  %v1362_v36 = vsel %vm718_vm3, %v692_v16, -inf }
  0xdc   :  { %v419_v27 = vadd.f32 %v1314_v44, %v418_v1  ;;  %v547_v31 = vadd.f32 %v1314_v44, %v546_v2  ;;  %v661_v37 = vmax.f32 %v427_v17, 0.0  ;;  %v1365_v40 = vsel %vm718_vm3, %v658_v22, -inf }
  0xdd   :  { %v1063_v9 = vpop.f32.mrf.mxu0  ;;  %v1095_v10 = vpop.f32.mrf.mxu1  ;;  %v693_v41 = vmax.f32 %v555_v23, 0.0  ;;  %v1370_v45 = vsel %vm718_vm3, %v690_v26, -inf }
  0xde   :  { %v440_v32 = vadd.f32 %v1063_v9, %v1314_v44  ;;  %v568_v33 = vadd.f32 %v1095_v10, %v1314_v44  ;;  %v659_v46 = vmax.f32 %v419_v27, 0.0  ;;  %v691_v51 = vmax.f32 %v547_v31, 0.0 }
  0xdf   :  { %v431_v18 = vpop.f32.mrf.mxu0  ;;  %v559_v19 = vpop.f32.mrf.mxu1  ;;  %v1376_v55 = vsel %vm718_vm3, %v661_v37, -inf  ;;  %v1384_v1 = vsel %vm718_vm3, %v693_v41, -inf }
  0xe0   :  { %v432_v42 = vadd.f32 %v1314_v44, %v431_v18  ;;  %v560_v43 = vadd.f32 %v1314_v44, %v559_v19  ;;  %v664_v52 = vmax.f32 %v440_v32, 0.0  ;;  %v696_v53 = vmax.f32 %v568_v33, 0.0 }
  0xe1   :  { %v1064_v28 = vpop.f32.mrf.mxu0  ;;  %v1096_v29 = vpop.f32.mrf.mxu1  ;;  %v1387_v2 = vsel %vm718_vm3, %v659_v46, -inf  ;;  %v1390_v7 = vsel %vm718_vm3, %v691_v51, -inf }
  0xe2   :  { %v443_v47 = vadd.f32 %v1064_v28, %v1314_v44  ;;  %v571_v48 = vadd.f32 %v1096_v29, %v1314_v44  ;;  %v662_v61 = vmax.f32 %v432_v42, 0.0  ;;  %v694_v62 = vmax.f32 %v560_v43, 0.0 }
  0xe3   :  { %v434_v38 = vpop.f32.mrf.mxu0  ;;  %v562_v39 = vpop.f32.mrf.mxu1  ;;  %v1393_v8 = vsel %vm718_vm3, %v664_v52, -inf  ;;  %v1396_v9 = vsel %vm718_vm3, %v696_v53, -inf }
  0xe4   :  { %v435_v54 = vadd.f32 %v1314_v44, %v434_v38  ;;  %v563_v56 = vadd.f32 %v1314_v44, %v562_v39  ;;  %v665_v3 = vmax.f32 %v443_v47, 0.0  ;;  %v697_v4 = vmax.f32 %v571_v48, 0.0 }
  0xe5   :  { %v1067_v49 = vpop.f32.mrf.mxu0  ;;  %v1099_v50 = vpop.f32.mrf.mxu1  ;;  %v1399_v19 = vsel %vm718_vm3, %v662_v61, -inf  ;;  %v1402_v22 = vsel %vm718_vm3, %v694_v62, -inf }
  0xe6   :  { %v456_v57 = vadd.f32 %v1067_v49, %v1314_v44  ;;  %v584_v58 = vadd.f32 %v1099_v50, %v1314_v44  ;;  %v663_v10 = vmax.f32 %v435_v54, 0.0  ;;  %v695_v13 = vmax.f32 %v563_v56, 0.0 }
  0xe7   :  { %v447_v59 = vpop.f32.mrf.mxu0  ;;  %v575_v60 = vpop.f32.mrf.mxu1  ;;  %v1406_v27 = vsel %vm718_vm3, %v665_v3, -inf  ;;  %v1409_v28 = vsel %vm718_vm3, %v697_v4, -inf }
  0xe8   :  { %v448_v63 = vadd.f32 %v1314_v44, %v447_v59  ;;  %v576_v0 = vadd.f32 %v1314_v44, %v575_v60  ;;  %v668_v14 = vmax.f32 %v456_v57, 0.0  ;;  %v700_v15 = vmax.f32 %v584_v58, 0.0 }
  0xe9   :  { %v1068_v5 = vpop.f32.mrf.mxu0  ;;  %v1100_v6 = vpop.f32.mrf.mxu1  ;;  %v1418_v37 = vsel %vm718_vm3, %v663_v10, -inf  ;;  %v1426_v42 = vsel %vm718_vm3, %v695_v13, -inf }
  0xea   :  { %v666_v16 = vmax.f32 %v448_v63, 0.0  ;;  %v698_v23 = vmax.f32 %v576_v0, 0.0  ;;  %v459_v26 = vadd.f32 %v1068_v5, %v1314_v44  ;;  %v1412_v29 = vadd.f32 %v1100_v6, %v1314_v44 }
  0xeb   :  { %v450_v17 = vpop.f32.mrf.mxu0  ;;  %v578_v18 = vpop.f32.mrf.mxu1  ;;  %v1429_v43 = vsel %vm718_vm3, %v668_v14, -inf  ;;  %v1432_v46 = vsel %vm718_vm3, %v700_v15, -inf }
  0xec   :  { %v1415_v31 = vadd.f32 %v1314_v44, %v450_v17  ;;  %v1421_v38 = vadd.f32 %v1314_v44, %v578_v18  ;;  %v1435_v47 = vsel %vm718_vm3, %v666_v16, -inf  ;;  %v1438_v50 = vsel %vm718_vm3, %v698_v23, -inf }
  0xed   :  { %v1071_v32 = vpop.f32.mrf.mxu0  ;;  %v1103_v33 = vpop.f32.mrf.mxu1  ;;  %v669_v51 = vmax.f32 %v459_v26, 0.0  ;;  %v701_v54 = vmax.f32 %v1412_v29, 0.0 }
  0xee   :  { %v472_v39 = vadd.f32 %v1071_v32, %v1314_v44  ;;  %v600_v41 = vadd.f32 %v1103_v33, %v1314_v44  ;;  %v667_v56 = vmax.f32 %v1415_v31, 0.0  ;;  %v699_v61 = vmax.f32 %v1421_v38, 0.0 }
  0xef   :  { %v463_v48 = vpop.f32.mrf.mxu0  ;;  %v591_v49 = vpop.f32.mrf.mxu1  ;;  %v1453_v18 = vsel %vm718_vm3, %v669_v51, -inf }
  0xf0   :  { %v672_v52 = vmax.f32 %v472_v39, 0.0  ;;  %v704_v53 = vmax.f32 %v600_v41, 0.0  ;;  %v464_v57 = vadd.f32 %v1314_v44, %v463_v48  ;;  %v592_v58 = vadd.f32 %v1314_v44, %v591_v49 }
  0xf1   :  { %v1072_v59 = vpop.f32.mrf.mxu0  ;;  %v1104_v60 = vpop.f32.mrf.mxu1 }
  0xf2   :  { %v734_v62 = vsel %vm718_vm3, %v672_v52, -inf  ;;  %v475_v63 = vadd.f32 %v1072_v59, %v1314_v44  ;;  %v603_v0 = vadd.f32 %v1104_v60, %v1314_v44  ;;  %v738_v4 = vsel %vm718_vm3, %v704_v53, -inf }
  0xf3   :  { %v735_v3 = vmax.f32 %v1329_v11, %v734_v62  ;;  %v670_v5 = vmax.f32 %v464_v57, 0.0  ;;  %v702_v6 = vmax.f32 %v592_v58, 0.0  ;;  %v466_v10 = vpop.f32.mrf.mxu0  ;;  %v594_v13 = vpop.f32.mrf.mxu1 }
  0xf4   :  { %v673_v14 = vmax.f32 %v475_v63, 0.0  ;;  %v705_v15 = vmax.f32 %v603_v0, 0.0  ;;  %v467_v16 = vadd.f32 %v1314_v44, %v466_v10  ;;  %v595_v17 = vadd.f32 %v1314_v44, %v594_v13 }
  0xf5   :  { %v737_v23 = vmax.f32 %v735_v3, %v1332_v12  ;;  %v720_v26 = vsel %vm718_vm3, %v670_v5, -inf  ;;  %v724_v11 = vsel %vm718_vm3, %v702_v6, -inf  ;;  %v1075_v32 = vpop.f32.mrf.mxu0  ;;  %v1107_v33 = vpop.f32.mrf.mxu1 }
  0xf6   :  { %v721_v39 = vmax.f32 %v1336_v20, %v720_v26  ;;  %v741_v41 = vsel %vm718_vm3, %v673_v14, -inf  ;;  %v745_v48 = vsel %vm718_vm3, %v705_v15, -inf  ;;  %v671_v49 = vmax.f32 %v467_v16, 0.0 }
  0xf7   :  { %v739_v52 = vmax.f32 %v737_v23, %v738_v4  ;;  %v742_v53 = vmax.f32 %v1343_v24, %v741_v41  ;;  %v703_v51 = vmax.f32 %v595_v17, 0.0  ;;  %v488_v57 = vadd.f32 %v1075_v32, %v1314_v44  ;;  %v479_v12 = vpop.f32.mrf.mxu0  ;;  %v607_v58 = vpop.f32.mrf.mxu1 }
  0xf8   :  { %v723_v59 = vmax.f32 %v721_v39, %v1339_v21  ;;  %v727_v60 = vsel %vm718_vm3, %v671_v49, -inf  ;;  %v616_v62 = vadd.f32 %v1107_v33, %v1314_v44  ;;  %v480_v20 = vadd.f32 %v1314_v44, %v479_v12 }
  0xf9   :  { %v1001_v63 = vpack.c.bf16 %v739_v52, %v739_v52  ;;  %v744_v0 = vmax.f32 %v742_v53, %v1346_v25  ;;  %v728_v3 = vmax.f32 %v1350_v30, %v727_v60  ;;  %v731_v24 = vsel %vm718_vm3, %v703_v51, -inf  ;;  %v1076_v4 = vpop.f32.mrf.mxu0  ;;  %v1108_v5 = vpop.f32.mrf.mxu1 }
  0xfa   :  { %v725_v6 = vmax.f32 %v723_v59, %v724_v11  ;;  %v676_v10 = vmax.f32 %v488_v57, 0.0  ;;  %v708_v13 = vmax.f32 %v616_v62, 0.0  ;;  %v674_v14 = vmax.f32 %v480_v20, 0.0 }
  0xfb   :  { %898 = vst.msk [vmem:[%s1613_s3 + $0x8] sm:$0xf] %vm895_vm4, %v1001_v63  ;;  %v746_v21 = vmax.f32 %v744_v0, %v745_v48  ;;  %v730_v15 = vmax.f32 %v728_v3, %v1356_v34  ;;  %v608_v25 = vadd.f32 %v1314_v44, %v607_v58  ;;  %v491_v30 = vadd.f32 %v1076_v4, %v1314_v44  ;;  %v482_v16 = vpop.f32.mrf.mxu0  ;;  %v610_v17 = vpop.f32.mrf.mxu1 }
  0xfc   :  { %v999_v23 = vpack.c.bf16 %v725_v6, %v725_v6  ;;  %v762_v26 = vsel %vm718_vm3, %v676_v10, -inf  ;;  %v766_v11 = vsel %vm718_vm3, %v708_v13, -inf  ;;  %v748_v32 = vsel %vm718_vm3, %v674_v14, -inf }
  0xfd   :  { %v1002_v33 = vpack.c.bf16 %v746_v21, %v746_v21  ;;  %v732_v39 = vmax.f32 %v730_v15, %v731_v24  ;;  %v763_v41 = vmax.f32 %v1359_v35, %v762_v26  ;;  %v749_v48 = vmax.f32 %v1365_v40, %v748_v32  ;;  %v1079_v34 = vpop.f32.mrf.mxu0  ;;  %v1111_v49 = vpop.f32.mrf.mxu1 }
  0xfe   :  { %896 = vst.msk [vmem:[%s1613_s3] sm:$0xf] %vm895_vm4, %v999_v23  ;;  %v706_v52 = vmax.f32 %v608_v25, 0.0  ;;  %v677_v53 = vmax.f32 %v491_v30, 0.0  ;;  %v619_v51 = vadd.f32 %v1108_v5, %v1314_v44  ;;  %v483_v57 = vadd.f32 %v1314_v44, %v482_v16 }
  0xff   :  { %899 = vst.msk [vmem:[%s1613_s3 + $0xc] sm:$0xf] %vm895_vm4, %v1002_v33  ;;  %v1000_v35 = vpack.c.bf16 %v732_v39, %v732_v39  ;;  %v765_v40 = vmax.f32 %v763_v41, %v1362_v36  ;;  %v751_v12 = vmax.f32 %v749_v48, %v1370_v45  ;;  %v611_v58 = vadd.f32 %v1314_v44, %v610_v17  ;;  %v495_v59 = vpop.f32.mrf.mxu0  ;;  %v623_v60 = vpop.f32.mrf.mxu1 }
 0x100   :  { %v752_v62 = vsel %vm718_vm3, %v706_v52, -inf  ;;  %v769_v20 = vsel %vm718_vm3, %v677_v53, -inf  ;;  %v709_v63 = vmax.f32 %v619_v51, 0.0  ;;  %v675_v0 = vmax.f32 %v483_v57, 0.0 }
 0x101   :  { %897 = vst.msk [vmem:[%s1613_s3 + $0x4] sm:$0xf] %vm895_vm4, %v1000_v35  ;;  %v767_v3 = vmax.f32 %v765_v40, %v766_v11  ;;  %v753_v24 = vmax.f32 %v751_v12, %v752_v62  ;;  %v770_v36 = vmax.f32 %v1376_v55, %v769_v20  ;;  %v707_v45 = vmax.f32 %v611_v58, 0.0  ;;  %v1080_v4 = vpop.f32.mrf.mxu0  ;;  %v1112_v5 = vpop.f32.mrf.mxu1 }
 0x102   :  { %v773_v6 = vsel %vm718_vm3, %v709_v63, -inf  ;;  %v755_v10 = vsel %vm718_vm3, %v675_v0, -inf  ;;  %v504_v13 = vadd.f32 %v1079_v34, %v1314_v44  ;;  %v632_v14 = vadd.f32 %v1111_v49, %v1314_v44 }
 0x103   :  { %v1005_v21 = vpack.c.bf16 %v767_v3, %v767_v3  ;;  %v1003_v15 = vpack.c.bf16 %v753_v24, %v753_v24  ;;  %v772_v25 = vmax.f32 %v770_v36, %v1384_v1  ;;  %v756_v30 = vmax.f32 %v1387_v2, %v755_v10  ;;  %v498_v16 = vpop.f32.mrf.mxu0  ;;  %v626_v17 = vpop.f32.mrf.mxu1 }
 0x104   :  { %v759_v55 = vsel %vm718_vm3, %v707_v45, -inf  ;;  %v680_v23 = vmax.f32 %v504_v13, 0.0  ;;  %v712_v26 = vmax.f32 %v632_v14, 0.0  ;;  %v496_v11 = vadd.f32 %v1314_v44, %v495_v59 }
 0x105   :  { %902 = vst.msk [vmem:[%s1613_s3 + $0x18] sm:$0xf] %vm895_vm4, %v1005_v21  ;;  %900 = vst.msk [vmem:[%s1613_s3 + $0x10] sm:$0xf] %vm895_vm4, %v1003_v15  ;;  %v774_v1 = vmax.f32 %v772_v25, %v773_v6  ;;  %v758_v2 = vmax.f32 %v756_v30, %v1390_v7  ;;  %v624_v32 = vadd.f32 %v1314_v44, %v623_v60  ;;  %v1083_v39 = vpop.f32.mrf.mxu0  ;;  %v1115_v41 = vpop.f32.mrf.mxu1 }
 0x106   :  { %v507_v33 = vadd.f32 %v1080_v4, %v1314_v44  ;;  %v790_v48 = vsel %vm718_vm3, %v680_v23, -inf  ;;  %v794_v34 = vsel %vm718_vm3, %v712_v26, -inf  ;;  %v678_v49 = vmax.f32 %v496_v11, 0.0 }
 0x107   :  { %v635_v52 = vadd.f32 %v1112_v5, %v1314_v44  ;;  %v1006_v53 = vpack.c.bf16 %v774_v1, %v774_v1  ;;  %v760_v51 = vmax.f32 %v758_v2, %v759_v55  ;;  %v791_v57 = vmax.f32 %v1393_v8, %v790_v48  ;;  %v511_v40 = vpop.f32.mrf.mxu0  ;;  %v639_v60 = vpop.f32.mrf.mxu1 }
 0x108   :  { %v710_v35 = vmax.f32 %v624_v32, 0.0  ;;  %v776_v7 = vsel %vm718_vm3, %v678_v49, -inf  ;;  %v681_v12 = vmax.f32 %v507_v33, 0.0  ;;  %v499_v59 = vadd.f32 %v1314_v44, %v498_v16 }
 0x109   :  { %v713_v58 = vmax.f32 %v635_v52, 0.0  ;;  %903 = vst.msk [vmem:[%s1613_s3 + $0x1c] sm:$0xf] %vm895_vm4, %v1006_v53  ;;  %v1004_v62 = vpack.c.bf16 %v760_v51, %v760_v51  ;;  %v793_v20 = vmax.f32 %v791_v57, %v1396_v9  ;;  %v777_v63 = vmax.f32 %v1399_v19, %v776_v7  ;;  %v1084_v5 = vpop.f32.mrf.mxu0  ;;  %v1116_v21 = vpop.f32.mrf.mxu1 }
 0x10a   :  { %v780_v8 = vsel %vm718_vm3, %v710_v35, -inf  ;;  %v797_v0 = vsel %vm718_vm3, %v681_v12, -inf  ;;  %v679_v24 = vmax.f32 %v499_v59, 0.0  ;;  %v627_v36 = vadd.f32 %v1314_v44, %v626_v17 }
 0x10b   :  { %v801_v3 = vsel %vm718_vm3, %v713_v58, -inf  ;;  %901 = vst.msk [vmem:[%s1613_s3 + $0x14] sm:$0xf] %vm895_vm4, %v1004_v62  ;;  %v795_v45 = vmax.f32 %v793_v20, %v794_v34  ;;  %v779_v4 = vmax.f32 %v777_v63, %v1402_v22  ;;  %v798_v9 = vmax.f32 %v1406_v27, %v797_v0  ;;  %v514_v2 = vpop.f32.mrf.mxu0 }
 0x10c   :  { %v520_v19 = vadd.f32 %v1083_v39, %v1314_v44  ;;  %v783_v6 = vsel %vm718_vm3, %v679_v24, -inf  ;;  %v711_v10 = vmax.f32 %v627_v36, 0.0  ;;  %v648_v13 = vadd.f32 %v1115_v41, %v1314_v44  ;;  %v642_v39 = vpop.f32.mrf.mxu1 }
 0x10d   :  { %v512_v14 = vadd.f32 %v1314_v44, %v511_v40  ;;  %v1009_v15 = vpack.c.bf16 %v795_v45, %v795_v45  ;;  %v781_v25 = vmax.f32 %v779_v4, %v780_v8  ;;  %v800_v30 = vmax.f32 %v798_v9, %v1409_v28 }
 0x10e   :  { %v784_v16 = vmax.f32 %v1418_v37, %v783_v6  ;;  %v787_v22 = vsel %vm718_vm3, %v711_v10, -inf  ;;  %v684_v27 = vmax.f32 %v520_v19, 0.0  ;;  %v716_v17 = vmax.f32 %v648_v13, 0.0 }
 0x10f   :  { %v682_v55 = vmax.f32 %v512_v14, 0.0  ;;  %906 = vst.msk [vmem:[%s1613_s3 + $0x28] sm:$0xf] %vm895_vm4, %v1009_v15  ;;  %v1007_v23 = vpack.c.bf16 %v781_v25, %v781_v25  ;;  %v802_v26 = vmax.f32 %v800_v30, %v801_v3  ;;  %v640_v1 = vadd.f32 %v1314_v44, %v639_v60 }
 0x110   :  { %v786_v11 = vmax.f32 %v784_v16, %v1426_v42  ;;  %v818_v28 = vsel %vm718_vm3, %v684_v27, -inf  ;;  %v822_v37 = vsel %vm718_vm3, %v716_v17, -inf  ;;  %v523_v33 = vadd.f32 %v1084_v5, %v1314_v44 }
 0x111   :  { %v804_v32 = vsel %vm718_vm3, %v682_v55, -inf  ;;  %904 = vst.msk [vmem:[%s1613_s3 + $0x20] sm:$0xf] %vm895_vm4, %v1007_v23  ;;  %v1010_v41 = vpack.c.bf16 %v802_v26, %v802_v26  ;;  %v819_v42 = vmax.f32 %v1429_v43, %v818_v28  ;;  %v714_v49 = vmax.f32 %v640_v1, 0.0 }
 0x112   :  { %v788_v48 = vmax.f32 %v786_v11, %v787_v22  ;;  %v805_v34 = vmax.f32 %v1435_v47, %v804_v32  ;;  %v685_v52 = vmax.f32 %v523_v33, 0.0  ;;  %v651_v53 = vadd.f32 %v1116_v21, %v1314_v44 }
 0x113   :  { %v515_v51 = vadd.f32 %v1314_v44, %v514_v2  ;;  %907 = vst.msk [vmem:[%s1613_s3 + $0x2c] sm:$0xf] %vm895_vm4, %v1010_v41  ;;  %v821_v35 = vmax.f32 %v819_v42, %v1432_v46  ;;  %v643_v43 = vadd.f32 %v1314_v44, %v642_v39  ;;  %v808_v47 = vsel %vm718_vm3, %v714_v49, -inf }
 0x114   :  { %v1008_v57 = vpack.c.bf16 %v788_v48, %v788_v48  ;;  %v807_v40 = vmax.f32 %v805_v34, %v1438_v50  ;;  %v825_v7 = vsel %vm718_vm3, %v685_v52, -inf  ;;  %v717_v12 = vmax.f32 %v651_v53, 0.0 }
 0x115   :  { %v683_v58 = vmax.f32 %v515_v51, 0.0  ;;  %v823_v59 = vmax.f32 %v821_v35, %v822_v37  ;;  %v826_v62 = vmax.f32 %v1453_v18, %v825_v7  ;;  %v827_v46 = vsel %vm718_vm3, %v701_v54, -inf }
 0x116   :  { %905 = vst.msk [vmem:[%s1613_s3 + $0x24] sm:$0xf] %vm895_vm4, %v1008_v57  ;;  %v809_v60 = vmax.f32 %v807_v40, %v808_v47  ;;  %v810_v44 = vsel %vm718_vm3, %v667_v56, -inf  ;;  %v715_v20 = vmax.f32 %v643_v43, 0.0  ;;  %v813_v24 = vsel %vm718_vm3, %v699_v61, -inf }
 0x117   :  { %v811_v50 = vsel %vm718_vm3, %v683_v58, -inf  ;;  %v1013_v63 = vpack.c.bf16 %v823_v59, %v823_v59  ;;  %v828_v0 = vmax.f32 %v826_v62, %v827_v46  ;;  %v829_v18 = vsel %vm718_vm3, %v717_v12, -inf }
 0x118   :  { %v1011_v8 = vpack.c.bf16 %v809_v60, %v809_v60  ;;  %v812_v3 = vmax.f32 %v810_v44, %v811_v50  ;;  %v815_v54 = vsel %vm718_vm3, %v715_v20, -inf }
 0x119   :  { %910 = vst.msk [vmem:[%s1613_s3 + $0x38] sm:$0xf] %vm895_vm4, %v1013_v63  ;;  %v830_v29 = vmax.f32 %v828_v0, %v829_v18 }
 0x11a   :  { %908 = vst.msk [vmem:[%s1613_s3 + $0x30] sm:$0xf] %vm895_vm4, %v1011_v8  ;;  %v814_v31 = vmax.f32 %v812_v3, %v813_v24 }
 0x11b   :  { %v1014_v56 = vpack.c.bf16 %v830_v29, %v830_v29 }
 0x11c   :  { %v816_v38 = vmax.f32 %v814_v31, %v815_v54 }
 0x11d   :  { %911 = vst.msk [vmem:[%s1613_s3 + $0x3c] sm:$0xf] %vm895_vm4, %v1014_v56 }
 0x11e   :  { %v1012_v61 = vpack.c.bf16 %v816_v38, %v816_v38 }
 0x120   :  { %909 = vst.msk [vmem:[%s1613_s3 + $0x34] sm:$0xf] %vm895_vm4, %v1012_v61 }

// kernel: card_classifier_forward.5
= control target key start
LH: loop header
LB: loop body
LE: loop exit
PB: predicated region body
PF: predicated region fallthrough
CT: control target
= control target key end

     0   :  { %vm318_vm0 = vcmask 261120   ;;  %vm553_vm1 = vcmask 523264   ;;  %vm598_vm2 = vcmask 519168   ;;  %s1039_s1 = inlined_call_operand.vmem [shape: bf16[288,64], index: 1, kind: input, shape index: {}]   ;;  %s1040_s0 = inlined_call_operand.vmem [shape: bf16[4,32,288], index: 0, kind: input, shape index: {}]   ;;  %s1041_s2 = inlined_call_operand.vmem [shape: f32[1,64], index: 2, kind: input, shape index: {}]   ;;  %s1042_s3 = inlined_call_operand.vmem [shape: bf16[32,64], index: 3, kind: output, shape index: {}]  }
   0x1   :  { %v776_v0 = vld [vmem:[%s1039_s1 + $0x78] sm:$0xff]   ;;  %v778_v2 = vld [vmem:[%s1039_s1 + $0x70] sm:$0xff]   ;;  %v780_v4 = vld [vmem:[%s1039_s1 + $0x68] sm:$0xff]  }
   0x2   :  { %v777_v1 = vld [vmem:[%s1039_s1 + $0x38] sm:$0xff]   ;;  %666 = vmatprep.subr.bf16.mxu0 %v776_v0  ;;  %760 = vmatprep.subr.bf16.mxu1 %v776_v0  ;;  %v779_v3 = vld [vmem:[%s1039_s1 + $0x30] sm:$0xff]   ;;  %v781_v5 = vld [vmem:[%s1039_s1 + $0x28] sm:$0xff]  }
   0x3   :  { %667 = vmatpush3.bf16.msra.mxu0 %v777_v1  ;;  %768 = vmatpush3.bf16.msra.mxu1 %v777_v1  ;;  %v782_v6 = vld [vmem:[%s1039_s1 + $0x60] sm:$0xff]   ;;  %v784_v8 = vld [vmem:[%s1039_s1 + $0x58] sm:$0xff]   ;;  %v786_v10 = vld [vmem:[%s1039_s1 + $0x50] sm:$0xff]  }
   0x4   :  { %668 = vmatprep.subr.bf16.mxu0 %v778_v2  ;;  %761 = vmatprep.subr.bf16.mxu1 %v778_v2  ;;  %v783_v7 = vld [vmem:[%s1039_s1 + $0x20] sm:$0xff]   ;;  %v785_v9 = vld [vmem:[%s1039_s1 + $0x18] sm:$0xff]   ;;  %v787_v13 = vld [vmem:[%s1039_s1 + $0x10] sm:$0xff]  }
   0x5   :  { %v794_v11 = vld [vmem:[%s1040_s0 + $0x4] ss:$12 sps:$4 sm:$0xff]   ;;  %v797_v12 = vld [vmem:[%s1040_s0 + $0x94] ss:$12 sps:$4 sm:$0xff]   ;;  %v788_v14 = vld [vmem:[%s1039_s1 + $0x48] sm:$0xff]  }
   0x6   :  { %375 = vmatprep.mubr.bf16.mxu0 %v794_v11  ;;  %423 = vmatprep.mubr.bf16.mxu1 %v797_v12  ;;  %v789_v15 = vld [vmem:[%s1039_s1 + $0x8] sm:$0xff]   ;;  %v790_v16 = vld [vmem:[%s1039_s1 + $0x40] sm:$0xff]   ;;  %v795_v20 = vld [vmem:[%s1040_s0 + $0x90] ss:$12 sps:$4 sm:$0xff]  }
   0x7   :  { %669 = vmatpush3.bf16.msra.mxu0 %v779_v3  ;;  %769 = vmatpush3.bf16.msra.mxu1 %v779_v3  ;;  %v791_v17 = vld [vmem:[%s1039_s1] sm:$0xff]   ;;  %v798_v19 = vld [vmem:[%s1039_s1 + $0x88] sm:$0xff]   ;;  %v809_v28 = vld [vmem:[%s1040_s0 + $0x30] ss:$12 sps:$4 sm:$0xff]  }
   0x8   :  { %670 = vmatprep.subr.bf16.mxu0 %v780_v4  ;;  %762 = vmatprep.subr.bf16.mxu1 %v780_v4  ;;  %v792_v18 = vld [vmem:[%s1040_s0] ss:$12 sps:$4 sm:$0xff]   ;;  %v799_v21 = vld [vmem:[%s1040_s0 + $0x1c] ss:$12 sps:$4 sm:$0xff]   ;;  %v803_v24 = vld [vmem:[%s1040_s0 + $0x18] ss:$12 sps:$4 sm:$0xff]  }
   0x9   :  { %v801_v22 = vld [vmem:[%s1040_s0 + $0xac] ss:$12 sps:$4 sm:$0xff]   ;;  %v805_v23 = vld [vmem:[%s1039_s1 + $0x80] sm:$0xff]   ;;  %v804_v25 = vld [vmem:[%s1040_s0 + $0xa8] ss:$12 sps:$4 sm:$0xff]  }
   0xa   :  { %v806_v26 = vld [vmem:[%s1040_s0 + $0x34] ss:$12 sps:$4 sm:$0xff]   ;;  %v811_v30 = vld [vmem:[%s1040_s0 + $0x4c] ss:$12 sps:$4 sm:$0xff]   ;;  %v815_v33 = vld [vmem:[%s1040_s0 + $0x50] ss:$12 sps:$4 sm:$0xff]  }
   0xb   :  { %671 = vmatpush3.bf16.msra.mxu0 %v781_v5  ;;  %770 = vmatpush3.bf16.msra.mxu1 %v781_v5  ;;  %v808_v27 = vld [vmem:[%s1040_s0 + $0x8] ss:$12 sps:$4 sm:$0xff]   ;;  %v810_v29 = vld [vmem:[%s1040_s0 + $0x20] ss:$12 sps:$4 sm:$0xff]   ;;  %v813_v31 = vld [vmem:[%s1040_s0 + $0x38] ss:$12 sps:$4 sm:$0xff]  }
   0xc   :  { %672 = vmatprep.subr.bf16.mxu0 %v782_v6  ;;  %763 = vmatprep.subr.bf16.mxu1 %v782_v6  ;;  %v814_v32 = vld [vmem:[%s1040_s0 + $0x48] ss:$12 sps:$4 sm:$0xff]   ;;  %v816_v34 = vld [vmem:[%s1040_s0 + $0x64] ss:$12 sps:$4 sm:$0xff]   ;;  %v819_v36 = vld [vmem:[%s1040_s0 + $0x60] ss:$12 sps:$4 sm:$0xff]  }
   0xd   :  { %v818_v35 = vld [vmem:[%s1040_s0 + $0x68] ss:$12 sps:$4 sm:$0xff]   ;;  %v820_v37 = vld [vmem:[%s1040_s0 + $0x80] ss:$12 sps:$4 sm:$0xff]   ;;  %v823_v39 = vld [vmem:[%s1040_s0 + $0x98] ss:$12 sps:$4 sm:$0xff]  }
   0xe   :  { %v821_v38 = vld [vmem:[%s1040_s0 + $0x7c] ss:$12 sps:$4 sm:$0xff]   ;;  %v824_v40 = vld [vmem:[%s1040_s0 + $0x78] ss:$12 sps:$4 sm:$0xff]   ;;  %v983_v11 = vld [vmem:[%s1041_s2] ss:$0 sm:$0xff] }
   0xf   :  { %673 = vmatpush3.bf16.msra.mxu0 %v783_v7  ;;  %771 = vmatpush3.bf16.msra.mxu1 %v783_v7  ;;  %v825_v41 = vld [vmem:[%s1040_s0 + $0xb0] ss:$12 sps:$4 sm:$0xff]  }
  0x10   :  { %674 = vmatprep.subr.bf16.mxu0 %v784_v8  ;;  %764 = vmatprep.subr.bf16.mxu1 %v784_v8 }
  0x13   :  { %675 = vmatpush3.bf16.msra.mxu0 %v785_v9  ;;  %772 = vmatpush3.bf16.msra.mxu1 %v785_v9 }
  0x14   :  { %676 = vmatprep.subr.bf16.mxu0 %v786_v10  ;;  %765 = vmatprep.subr.bf16.mxu1 %v786_v10 }
  0x17   :  { %677 = vmatpush3.bf16.msra.mxu0 %v787_v13  ;;  %773 = vmatpush3.bf16.msra.mxu1 %v787_v13 }
  0x18   :  { %678 = vmatprep.subr.bf16.mxu0 %v788_v14  ;;  %766 = vmatprep.subr.bf16.mxu1 %v788_v14 }
  0x1b   :  { %679 = vmatpush3.bf16.msra.mxu0 %v789_v15  ;;  %774 = vmatpush3.bf16.msra.mxu1 %v789_v15 }
  0x1c   :  { %680 = vmatprep.subr.bf16.mxu0 %v790_v16  ;;  %767 = vmatprep.subr.bf16.mxu1 %v790_v16 }
  0x1f   :  { %681 = vmatpush3.bf16.msra.mxu0 %v791_v17  ;;  %775 = vmatpush3.bf16.msra.mxu1 %v791_v17 }
  0x20   :  { %740 = vmatprep.subr.bf16.mxu1 %v798_v19 }
  0x22   :  { %376 = vmatmul.mubr.bf16.vlgmr.msra.gmra.mxu0 %v792_v18  ;;  %424 = vmatmul.mubr.bf16.vlgmr.msra.gmra.mxu1 %v795_v20 }
  0x23   :  { %741 = vmatpush3.bf16.msra.mxu1 %v798_v19  ;;  %383 = vmatprep.mubr.bf16.mxu0 %v799_v21 }
  0x24   :  { %431 = vmatprep.mubr.bf16.mxu1 %v801_v22  ;;  %742 = vmatprep.subr.bf16.mxu1 %v805_v23 }
  0x27   :  { %743 = vmatpush3.bf16.msra.mxu1 %v805_v23 }
  0x2a   :  { %384 = vmatmul.mubr.bf16.gmra.mxu0 %v803_v24  ;;  %432 = vmatmul.mubr.bf16.gmra.mxu1 %v804_v25 }
  0x2b   :  { %391 = vmatprep.mubr.bf16.mxu0 %v806_v26  ;;  %744 = vmatprep.mubr.msk.bf16.mxu1 %vm318_vm0, %v808_v27 }
  0x32   :  { %392 = vmatmul.mubr.bf16.gmra.mxu0 %v809_v28  ;;  %745 = vmatmul.mubr.msk.bf16.vlgmr.msra.gmra.mxu1 %vm318_vm0, %v810_v29 }
  0x33   :  { %399 = vmatprep.mubr.bf16.mxu0 %v811_v30  ;;  %748 = vmatprep.mubr.msk.bf16.mxu1 %vm318_vm0, %v813_v31 }
  0x3a   :  { %400 = vmatmul.mubr.bf16.gmra.mxu0 %v814_v32  ;;  %749 = vmatmul.mubr.msk.bf16.gmra.mxu1 %vm318_vm0, %v815_v33 }
  0x3b   :  { %407 = vmatprep.mubr.bf16.mxu0 %v816_v34  ;;  %752 = vmatprep.mubr.msk.bf16.mxu1 %vm318_vm0, %v818_v35 }
  0x42   :  { %408 = vmatmul.mubr.bf16.gmra.mxu0 %v819_v36  ;;  %753 = vmatmul.mubr.msk.bf16.gmra.mxu1 %vm318_vm0, %v820_v37 }
  0x43   :  { %415 = vmatprep.mubr.bf16.mxu0 %v821_v38  ;;  %756 = vmatprep.mubr.msk.bf16.mxu1 %vm318_vm0, %v823_v39 }
  0x4a   :  { %416 = vmatmul.mubr.bf16.gmra.mxu0 %v824_v40  ;;  %757 = vmatmul.mubr.msk.bf16.gmra.mxu1 %vm318_vm0, %v825_v41 }
  0xe2   :  { %v682_v42 = vpop.f32.mrf.mxu0  ;;  %v718_v43 = vpop.f32.mrf.mxu1 }
  0xe4   :  { %v683_v44 = vpop.f32.mrf.mxu0  ;;  %v719_v45 = vpop.f32.mrf.mxu1 }
  0xe5   :  { %v684_v9 = vadd.f32 %v683_v44, %v682_v42  ;;  %v720_v29 = vadd.f32 %v719_v45, %v718_v43 }
  0xe6   :  { %v685_v46 = vpop.f32.mrf.mxu0  ;;  %v721_v47 = vpop.f32.mrf.mxu1 }
  0xe7   :  { %v378_v22 = vadd.f32 %v684_v9, %v983_v11 }
  0xe8   :  { %v686_v48 = vpop.f32.mrf.mxu0  ;;  %v722_v49 = vpop.f32.mrf.mxu1 }
  0xe9   :  { %v687_v16 = vadd.f32 %v686_v48, %v685_v46  ;;  %v723_v33 = vadd.f32 %v722_v49, %v721_v47 }
  0xea   :  { %v688_v50 = vpop.f32.mrf.mxu0  ;;  %v724_v51 = vpop.f32.mrf.mxu1 }
  0xeb   :  { %v381_v35 = vadd.f32 %v687_v16, %v983_v11 }
  0xec   :  { %v689_v52 = vpop.f32.mrf.mxu0  ;;  %v725_v53 = vpop.f32.mrf.mxu1 }
  0xed   :  { %v690_v10 = vadd.f32 %v689_v52, %v688_v50  ;;  %v726_v34 = vadd.f32 %v725_v53, %v724_v51 }
  0xee   :  { %v691_v54 = vpop.f32.mrf.mxu0  ;;  %v727_v55 = vpop.f32.mrf.mxu1 }
  0xef   :  { %v386_v21 = vadd.f32 %v690_v10, %v983_v11 }
  0xf0   :  { %v692_v56 = vpop.f32.mrf.mxu0  ;;  %v728_v57 = vpop.f32.mrf.mxu1 }
  0xf1   :  { %v693_v20 = vadd.f32 %v692_v56, %v691_v54  ;;  %v729_v39 = vadd.f32 %v728_v57, %v727_v55  ;;  %v434_v54 = vadd.f32 %v726_v34, %v983_v11  ;;  %v426_v56 = vadd.f32 %v720_v29, %v983_v11 }
  0xf2   :  { %v694_v58 = vpop.f32.mrf.mxu0  ;;  %v746_v59 = vpop.f32.mrf.mxu1  ;;  %v429_v57 = vadd.f32 %v723_v33, %v983_v11 }
  0xf3   :  { %v483_v30 = vadd.f32 %v746_v59, %v386_v21  ;;  %v389_v40 = vadd.f32 %v693_v20, %v983_v11 }
  0xf4   :  { %v695_v60 = vpop.f32.mrf.mxu0  ;;  %v474_v61 = vpop.f32.mrf.mxu1 }
  0xf5   :  { %v696_v6 = vadd.f32 %v695_v60, %v694_v58  ;;  %v475_v31 = vadd.f32 %v474_v61, %v378_v22  ;;  %v539_v48 = vmax.f32 %v483_v30, 0.0  ;;  %v437_v61 = vadd.f32 %v729_v39, %v983_v11 }
  0xf6   :  { %v697_v62 = vpop.f32.mrf.mxu0  ;;  %v747_v63 = vpop.f32.mrf.mxu1 }
  0xf7   :  { %v394_v17 = vadd.f32 %v696_v6, %v983_v11  ;;  %v537_v49 = vmax.f32 %v475_v31, 0.0  ;;  %v486_v58 = vadd.f32 %v747_v63, %v389_v40 }
  0xf8   :  { %v698_v0 = vpop.f32.mrf.mxu0  ;;  %v477_v1 = vpop.f32.mrf.mxu1 }
  0xf9   :  { %v699_v12 = vadd.f32 %v698_v0, %v697_v62  ;;  %v478_v42 = vadd.f32 %v477_v1, %v381_v35  ;;  %v554_v6 = vsel %vm553_vm1, %v537_v49, -inf  ;;  %v540_v16 = vmax.f32 %v486_v58, 0.0 }
  0xfa   :  { %v700_v2 = vpop.f32.mrf.mxu0  ;;  %v750_v3 = vpop.f32.mrf.mxu1 }
  0xfb   :  { %v397_v26 = vadd.f32 %v699_v12, %v983_v11  ;;  %v538_v62 = vmax.f32 %v478_v42, 0.0 }
  0xfc   :  { %v701_v4 = vpop.f32.mrf.mxu0  ;;  %v490_v5 = vpop.f32.mrf.mxu1 }
  0xfd   :  { %v702_v13 = vadd.f32 %v701_v4, %v700_v2  ;;  %v491_v24 = vadd.f32 %v490_v5, %v394_v17  ;;  %v568_v5 = vsel %vm553_vm1, %v539_v48, -inf  ;;  %v561_v20 = vsel %vm553_vm1, %v538_v62, -inf }
  0xfe   :  { %v703_v7 = vpop.f32.mrf.mxu0  ;;  %v751_v8 = vpop.f32.mrf.mxu1 }
  0xff   :  { %v402_v23 = vadd.f32 %v702_v13, %v983_v11  ;;  %v541_v43 = vmax.f32 %v491_v24, 0.0 }
 0x100   :  { %v704_v14 = vpop.f32.mrf.mxu0  ;;  %v493_v15 = vpop.f32.mrf.mxu1 }
 0x101   :  { %v705_v25 = vadd.f32 %v704_v14, %v703_v7  ;;  %v494_v36 = vadd.f32 %v493_v15, %v397_v26  ;;  %v499_v44 = vadd.f32 %v750_v3, %v402_v23  ;;  %v555_v1 = vsel %vm553_vm1, %v541_v43, -inf }
 0x102   :  { %v706_v18 = vpop.f32.mrf.mxu0  ;;  %v986_v19 = vpop.f32.mrf.mxu1  ;;  %v556_v17 = vmax.f32 %v554_v6, %v555_v1 }
 0x103   :  { %v405_v45 = vadd.f32 %v705_v25, %v983_v11  ;;  %v542_v52 = vmax.f32 %v494_v36, 0.0  ;;  %v543_v0 = vmax.f32 %v499_v44, 0.0 }
 0x104   :  { %v707_v27 = vpop.f32.mrf.mxu0  ;;  %v506_v28 = vpop.f32.mrf.mxu1 }
 0x105   :  { %v708_v32 = vadd.f32 %v707_v27, %v706_v18  ;;  %v502_v2 = vadd.f32 %v751_v8, %v405_v45  ;;  %v562_v63 = vsel %vm553_vm1, %v542_v52, -inf  ;;  %v569_v21 = vsel %vm553_vm1, %v543_v0, -inf }
 0x106   :  { %v709_v37 = vpop.f32.mrf.mxu0  ;;  %v993_v38 = vpop.f32.mrf.mxu1  ;;  %v563_v26 = vmax.f32 %v561_v20, %v562_v63  ;;  %v570_v39 = vmax.f32 %v568_v5, %v569_v21  ;;  %v575_v45 = vsel %vm553_vm1, %v540_v16, -inf }
 0x107   :  { %v410_v41 = vadd.f32 %v708_v32, %v983_v11  ;;  %v544_v22 = vmax.f32 %v502_v2, 0.0 }
 0x108   :  { %v710_v46 = vpop.f32.mrf.mxu0  ;;  %v509_v47 = vpop.f32.mrf.mxu1 }
 0x109   :  { %v507_v50 = vadd.f32 %v506_v28, %v410_v41  ;;  %v711_v51 = vadd.f32 %v710_v46, %v709_v37  ;;  %v576_v40 = vsel %vm553_vm1, %v544_v22, -inf }
 0x10a   :  { %v712_v53 = vpop.f32.mrf.mxu0  ;;  %v758_v55 = vpop.f32.mrf.mxu1 }
 0x10b   :  { %v545_v59 = vmax.f32 %v507_v50, 0.0  ;;  %v413_v60 = vadd.f32 %v711_v51, %v983_v11  ;;  %v531_v12 = vadd.f32 %v758_v55, %v434_v54  ;;  %v577_v51 = vmax.f32 %v575_v45, %v576_v40 }
 0x10c   :  { %v713_v3 = vpop.f32.mrf.mxu0  ;;  %v522_v4 = vpop.f32.mrf.mxu1 }
 0x10d   :  { %v510_v7 = vadd.f32 %v509_v47, %v413_v60  ;;  %v714_v9 = vadd.f32 %v713_v3, %v712_v53  ;;  %v557_v10 = vsel %vm553_vm1, %v545_v59, -inf  ;;  %v523_v13 = vadd.f32 %v522_v4, %v426_v56 }
 0x10e   :  { %v715_v14 = vpop.f32.mrf.mxu0  ;;  %v759_v15 = vpop.f32.mrf.mxu1  ;;  %v558_v27 = vmax.f32 %v556_v17, %v557_v10  ;;  %v551_v31 = vmax.f32 %v531_v12, 0.0 }
 0x10f   :  { %v546_v18 = vmax.f32 %v510_v7, 0.0  ;;  %v418_v8 = vadd.f32 %v714_v9, %v983_v11  ;;  %v549_v23 = vmax.f32 %v523_v13, 0.0  ;;  %v534_v36 = vadd.f32 %v759_v15, %v437_v61 }
 0x110   :  { %v716_v24 = vpop.f32.mrf.mxu0  ;;  %v525_v25 = vpop.f32.mrf.mxu1  ;;  %v573_v48 = vsel %vm553_vm1, %v551_v31, -inf }
 0x111   :  { %v515_v28 = vadd.f32 %v986_v19, %v418_v8  ;;  %v717_v29 = vadd.f32 %v716_v24, %v715_v14  ;;  %v564_v30 = vsel %vm553_vm1, %v546_v18, -inf  ;;  %v559_v32 = vsel %vm553_vm1, %v549_v23, -inf }
 0x112   :  { %v526_v33 = vadd.f32 %v525_v25, %v429_v57  ;;  %v560_v35 = vmax.f32 %v558_v27, %v559_v32  ;;  %v565_v42 = vmax.f32 %v563_v26, %v564_v30 }
 0x113   :  { %v547_v34 = vmax.f32 %v515_v28, 0.0  ;;  %v421_v37 = vadd.f32 %v717_v29, %v983_v11  ;;  %v552_v11 = vmax.f32 %v534_v36, 0.0 }
 0x114   :  { %v550_v41 = vmax.f32 %v526_v33, 0.0  ;;  %v662_v44 = vpack.c.bf16 %v560_v35, %v560_v35 }
 0x115   :  { %v571_v19 = vsel %vm553_vm1, %v547_v34, -inf  ;;  %v518_v43 = vadd.f32 %v993_v38, %v421_v37  ;;  %v580_v56 = vsel %vm553_vm1, %v552_v11, -inf }
 0x116   :  { %v572_v46 = vmax.f32 %v570_v39, %v571_v19  ;;  %v566_v47 = vsel %vm553_vm1, %v550_v41, -inf  ;;  %599 = vst.msk [vmem:[%s1042_s3] sm:$0xf] %vm598_vm2, %v662_v44 }
 0x117   :  { %v548_v49 = vmax.f32 %v518_v43, 0.0  ;;  %v567_v50 = vmax.f32 %v565_v42, %v566_v47 }
 0x118   :  { %v574_v52 = vmax.f32 %v572_v46, %v573_v48 }
 0x119   :  { %v578_v53 = vsel %vm553_vm1, %v548_v49, -inf  ;;  %v663_v38 = vpack.c.bf16 %v567_v50, %v567_v50 }
 0x11a   :  { %v664_v54 = vpack.c.bf16 %v574_v52, %v574_v52  ;;  %v579_v55 = vmax.f32 %v577_v51, %v578_v53 }
 0x11b   :  { %600 = vst.msk [vmem:[%s1042_s3 + $0x4] sm:$0xf] %vm598_vm2, %v663_v38 }
 0x11c   :  { %601 = vst.msk [vmem:[%s1042_s3 + $0x8] sm:$0xf] %vm598_vm2, %v664_v54  ;;  %v581_v57 = vmax.f32 %v579_v55, %v580_v56 }
 0x11e   :  { %v665_v58 = vpack.c.bf16 %v581_v57, %v581_v57 }
 0x120   :  { %602 = vst.msk [vmem:[%s1042_s3 + $0xc] sm:$0xf] %vm598_vm2, %v665_v58 }

// kernel: card_classifier_forward.7
= control target key start
LH: loop header
LB: loop body
LE: loop exit
PB: predicated region body
PF: predicated region fallthrough
CT: control target
= control target key end

     0   :  { %v100_v30 = vlaneseq  ;;  %v538_v34 = vmov 1966171168   ;;  %s665_s0 = inlined_call_operand.vmem [shape: bf16[2,512], index: 0, kind: input, shape index: {}]   ;;  %s666_s1 = inlined_call_operand.vmem [shape: bf16[512,128], index: 1, kind: input, shape index: {}]   ;;  %s667_s2 = inlined_call_operand.vmem [shape: f32[1,128], index: 2, kind: input, shape index: {}]   ;;  %s668_s3 = inlined_call_operand.hbm [shape: f32[2,128], index: 3, kind: output, shape index: {}]  }
   0x1   :  { %v484_v0 = vld [vmem:[%s666_s1 + $0x78] sm:$0xff]   ;;  %v488_v4 = vld [vmem:[%s666_s1 + $0x70] sm:$0xff]   ;;  %v492_v8 = vld [vmem:[%s666_s1 + $0x68] sm:$0xff]   ;;  %v98_v35 = vunpack.c.l.s4 %v538_v34 }
   0x2   :  { %v485_v1 = vld [vmem:[%s666_s1 + $0xf8] sm:$0xff]   ;;  %438 = vmatprep.subr.bf16.mxu0 %v484_v0  ;;  %v489_v5 = vld [vmem:[%s666_s1 + $0xf0] sm:$0xff]   ;;  %v493_v9 = vld [vmem:[%s666_s1 + $0xe8] sm:$0xff]   ;;  %v101_v36 = vshrl.u32 %v100_v30, 7 }
   0x3   :  { %v486_v2 = vld [vmem:[%s666_s1 + $0x38] sm:$0xff]   ;;  %460 = vmatprep.subr.bf16.mxu1 %v485_v1  ;;  %v490_v6 = vld [vmem:[%s666_s1 + $0x30] sm:$0xff]   ;;  %v494_v10 = vld [vmem:[%s666_s1 + $0x28] sm:$0xff]  }
   0x4   :  { %v487_v3 = vld [vmem:[%s666_s1 + $0xb8] sm:$0xff]   ;;  %439 = vmatpush3.bf16.msra.mxu0 %v486_v2  ;;  %v491_v7 = vld [vmem:[%s666_s1 + $0xb0] sm:$0xff]   ;;  %v495_v11 = vld [vmem:[%s666_s1 + $0xa8] sm:$0xff]  }
   0x5   :  { %461 = vmatpush3.bf16.msra.mxu1 %v487_v3  ;;  %440 = vmatprep.subr.bf16.mxu0 %v488_v4  ;;  %v496_v12 = vld [vmem:[%s666_s1 + $0x60] sm:$0xff]   ;;  %v500_v16 = vld [vmem:[%s666_s1 + $0x58] sm:$0xff]   ;;  %v504_v20 = vld [vmem:[%s666_s1 + $0x50] sm:$0xff]  }
   0x6   :  { %462 = vmatprep.subr.bf16.mxu1 %v489_v5  ;;  %v497_v13 = vld [vmem:[%s666_s1 + $0xe0] sm:$0xff]   ;;  %v501_v17 = vld [vmem:[%s666_s1 + $0xd8] sm:$0xff]   ;;  %v505_v21 = vld [vmem:[%s666_s1 + $0xd0] sm:$0xff]  }
   0x7   :  { %v498_v14 = vld [vmem:[%s666_s1 + $0x20] sm:$0xff]   ;;  %v502_v18 = vld [vmem:[%s666_s1 + $0x18] sm:$0xff]   ;;  %v506_v22 = vld [vmem:[%s666_s1 + $0x10] sm:$0xff]  }
   0x8   :  { %441 = vmatpush3.bf16.msra.mxu0 %v490_v6  ;;  %v499_v15 = vld [vmem:[%s666_s1 + $0xa0] sm:$0xff]   ;;  %v503_v19 = vld [vmem:[%s666_s1 + $0x98] sm:$0xff]   ;;  %v507_v23 = vld [vmem:[%s666_s1 + $0x90] sm:$0xff]  }
   0x9   :  { %463 = vmatpush3.bf16.msra.mxu1 %v491_v7  ;;  %442 = vmatprep.subr.bf16.mxu0 %v492_v8  ;;  %v508_v24 = vld [vmem:[%s666_s1 + $0x48] sm:$0xff]   ;;  %v512_v28 = vld [vmem:[%s666_s1 + $0x40] sm:$0xff]  }
   0xa   :  { %464 = vmatprep.subr.bf16.mxu1 %v493_v9  ;;  %v509_v25 = vld [vmem:[%s666_s1 + $0xc8] sm:$0xff]   ;;  %v513_v29 = vld [vmem:[%s666_s1 + $0xc0] sm:$0xff]  }
   0xb   :  { %v510_v26 = vld [vmem:[%s666_s1 + $0x8] sm:$0xff]   ;;  %v514_v31 = vld [vmem:[%s666_s1] sm:$0xff]  }
   0xc   :  { %443 = vmatpush3.bf16.msra.mxu0 %v494_v10  ;;  %v511_v27 = vld [vmem:[%s666_s1 + $0x88] sm:$0xff]   ;;  %v515_v32 = vld [vmem:[%s666_s1 + $0x80] sm:$0xff]  }
   0xd   :  { %465 = vmatpush3.bf16.msra.mxu1 %v495_v11  ;;  %444 = vmatprep.subr.bf16.mxu0 %v496_v12  ;;  %v405_v33 = vld.sshfl [vmem:[%s665_s0] sm:$0x33 pattern:$0x75316420] }
   0xe   :  { %466 = vmatprep.subr.bf16.mxu1 %v497_v13 }
  0x10   :  { %445 = vmatpush3.bf16.msra.mxu0 %v498_v14 }
  0x11   :  { %467 = vmatpush3.bf16.msra.mxu1 %v499_v15  ;;  %446 = vmatprep.subr.bf16.mxu0 %v500_v16 }
  0x12   :  { %468 = vmatprep.subr.bf16.mxu1 %v501_v17 }
  0x14   :  { %447 = vmatpush3.bf16.msra.mxu0 %v502_v18 }
  0x15   :  { %469 = vmatpush3.bf16.msra.mxu1 %v503_v19  ;;  %448 = vmatprep.subr.bf16.mxu0 %v504_v20 }
  0x16   :  { %470 = vmatprep.subr.bf16.mxu1 %v505_v21 }
  0x18   :  { %449 = vmatpush3.bf16.msra.mxu0 %v506_v22 }
  0x19   :  { %471 = vmatpush3.bf16.msra.mxu1 %v507_v23  ;;  %450 = vmatprep.subr.bf16.mxu0 %v508_v24 }
  0x1a   :  { %472 = vmatprep.subr.bf16.mxu1 %v509_v25 }
  0x1c   :  { %451 = vmatpush3.bf16.msra.mxu0 %v510_v26 }
  0x1d   :  { %473 = vmatpush3.bf16.msra.mxu1 %v511_v27  ;;  %452 = vmatprep.subr.bf16.mxu0 %v512_v28 }
  0x1e   :  { %474 = vmatprep.subr.bf16.mxu1 %v513_v29 }
  0x20   :  { %453 = vmatpush3.bf16.msra.mxu0 %v514_v31 }
  0x21   :  { %475 = vmatpush3.bf16.msra.mxu1 %v515_v32 }
  0x22   :  { %8 = vsyncpa [#allocation3], 0  ;;  %v96_v37 = vcombine.high %v405_v33, %v405_v33  ;;  %v99_v38 = vunpack.c.0.s8 %v98_v35  ;;  %v404_v46 = vld [vmem:[%s667_s2] ss:$0 sm:$0xff]  ;;  %s539_s24 = smov [#allocation2]  }
  0x23   :  { %s396_s25 = sshll.u32 %s539_s24, 4  ;;  %s397_s25 = int_to_ptr.vmem [resolvable:$true] %s396_s25 }
  0x24   :  { %v102_v39 = vsub.s32 %v99_v38, %v101_v36  ;;  %s516_s26 = scalar_lea.vmem %s397_s25, 32  ;;  %p521_p1 = scmp.lt.s32.totalorder %s397_s25, %s397_s25 }
  0x25   :  { %p517_p0 = scmp.ne.s32.totalorder %s397_s25, %s516_s26  ;;  %p522_p2 = scmp.lt.s32.totalorder %s516_s26, %s516_s26 }
  0x26   :  { %v110_v40 = vrot.slane %v96_v37, %v102_v39  ;;  %v103_v41 = vrot.slane %v405_v33, %v102_v39 }
  0x27   :  { %p523_p3 = por %p522_p2, %p521_p1 }
  0x28   :  { %341 = vmatprep.mubr.bf16.mxu0 %v110_v40  ;;  %v112_v42 = vcombine.high %v110_v40, %v110_v40  ;;  %v111_v43 = vcombine.high %v103_v41, %v103_v41 }
  0x29   :  { %342 = vmatmul.mubr.bf16.vlgmr.msra.gmra.mxu0 %v103_v41  ;;  %p524_p4 = pnand %p523_p3, %p517_p0 }
  0x2a   :  { %381 = vmatprep.mubr.bf16.mxu1 %v112_v42 }
  0x2b   :  { %382 = vmatmul.mubr.bf16.vlgmr.msra.gmra.mxu1 %v111_v43 }
  0xe9   :  { %v454_v44 = vpop.f32.mrf.mxu0 }
  0xeb   :  { %v476_v45 = vpop.f32.mrf.mxu1  ;;  %v455_v47 = vpop.f32.mrf.mxu0 }
  0xec   :  { %v456_v48 = vadd.f32 %v455_v47, %v454_v44 }
  0xed   :  { %v477_v49 = vpop.f32.mrf.mxu1  ;;  %v457_v50 = vpop.f32.mrf.mxu0 }
  0xee   :  { %v344_v51 = vadd.f32 %v456_v48, %v404_v46  ;;  %v478_v52 = vadd.f32 %v477_v49, %v476_v45 }
  0xef   :  { %v479_v53 = vpop.f32.mrf.mxu1  ;;  %v458_v54 = vpop.f32.mrf.mxu0 }
  0xf0   :  { %v384_v55 = vadd.f32 %v478_v52, %v344_v51 }
  0xf1   :  { %v480_v56 = vpop.f32.mrf.mxu1 }
  0xf2   :  { %389 = vst [vmem:[#allocation2] sm:$0x3] %v384_v55 }
  0xf3   :  { %527 = shalt.err (!%p524_p4)
}
  0xf4   :  { %399 = dma.vmem_to_hbm [thread:$0]  %s397_s25, 32, %s668_s3, [#allocation3]  }
  0xf5   :  { %536 = dma.done.wait [#allocation3], 32  }
  0xf6   :  { %537 = vsyncadd [#allocation3], 4294967264 }
  0xf7   :  { %403 = vsyncpa [#allocation3], 1 }

// kernel: card_classifier_forward.6
= control target key start
LH: loop header
LB: loop body
LE: loop exit
PB: predicated region body
PF: predicated region fallthrough
CT: control target
= control target key end

     0   :  { %s2344_s12 = smov 0   ;;  %s2346_s13 = smov 0   ;;  %s2839_s0 = inlined_call_operand.vmem [shape: bf16[2,1024], index: 0, kind: input, shape index: {}]   ;;  %s2840_s1 = inlined_call_operand.vmem [shape: bf16[1024,512], index: 1, kind: input, shape index: {}]   ;;  %s2841_s2 = inlined_call_operand.vmem [shape: f32[1,512], index: 2, kind: input, shape index: {}]   ;;  %s2842_s3 = inlined_call_operand.vmem [shape: bf16[2,512], index: 3, kind: output, shape index: {}]  }
   0x1   :  { %s2348_s14 = smov 0   ;;  %s2350_s15 = smov 0  }
   0x2   :  { %s2352_s16 = smov 0  }
   0x3 LB: > { %s25_s17 = sadd.s32 1, %s2315_s15  ;;  %p62_p1 = scmp.ne.s32.totalorder %s2307_s13, %s2303_s12  ;;  %s2319_s16 = sphi %s2352_s16, %s13_s16   ;;  %s2315_s15 = sphi %s2350_s15, %s2846_s15   ;;  %s2311_s14 = sphi %s2348_s14, %s2845_s14   ;;  %s2307_s13 = sphi %s2346_s13, %s2844_s13   ;;  %s2303_s12 = sphi %s2344_s12, %s2843_s12  }
   0x4   : > { %p27_p0 = scmp.ge.s32.totalorder %s25_s17, 2  ;;  %p63_p2 = scmp.eq.s32.totalorder %s2319_s16, 0 }
   0x5   : > { %s55_s19 = sadd.s32 1, %s2307_s13  ;;  %p1904_p5 = scmp.ge.s32.totalorder %s2319_s16, 2 }
   0x6   : > { %s2848_s17 = smov (%p27_p0, %s25_s17), 0  ;;  %p64_p3 = por %p63_p2, %p62_p1 }
   0x7   : > { %s51_s18 = ssub.s32 %s2315_s15, %s2848_s17  ;;  %143 = sbr.rel (%p1904_p5) target bundleno = 80 (0x50), region = 20 }
   0x8   : > { %p53_p4 = scmp.eq.s32.totalorder %s51_s18, 0 }
   0xa   : > { %s2379_s20 = scalar_select %p53_p4, %s2307_s13, %s55_s19  }
   0xc   : > { %146 = sbr.rel (!%p64_p3) target bundleno = 80 (0x50), region = 24  ;;  %s148_s21 = sand.u32 (%p64_p3), 1, %s2307_s13  }
   0xd   : > { %s2044_s22 = sshll.u32 (%p64_p3), %s2315_s15, 3  ;;  %s1905_s23 = sshll.u32 (%p64_p3), %s148_s21, 10 }
   0xe   : > { %s2387_s26 = scalar_lea.vmem (%p64_p3), %s2840_s1, %s2044_s22  ;;  %s2392_s27 = scalar_lea.vmem (%p64_p3), [#allocation3], %s1905_s23 }
   0xf   : > { %v439_v0 = vld [vmem:[%s2387_s26] sm:$0xff] (%p64_p3)  ;;  %v441_v1 = vld [vmem:[%s2387_s26 + $0x10] sm:$0xff] (%p64_p3) }
  0x10   : > { %v443_v2 = vld [vmem:[%s2387_s26 + $0x20] sm:$0xff] (%p64_p3)  ;;  %440 = vst [vmem:[%s2392_s27] sm:$0xff] (%p64_p3), %v439_v0  ;;  %442 = vst [vmem:[%s2392_s27 + $0x8] sm:$0xff] (%p64_p3), %v441_v1  ;;  %v445_v3 = vld [vmem:[%s2387_s26 + $0x30] sm:$0xff] (%p64_p3) }
  0x11   : > { %444 = vst [vmem:[%s2392_s27 + $0x10] sm:$0xff] %v443_v2  ;;  %v447_v4 = vld [vmem:[%s2387_s26 + $0x40] sm:$0xff]  ;;  %v449_v5 = vld [vmem:[%s2387_s26 + $0x50] sm:$0xff]  ;;  %446 = vst [vmem:[%s2392_s27 + $0x18] sm:$0xff] %v445_v3 }
  0x12   : > { %448 = vst [vmem:[%s2392_s27 + $0x20] sm:$0xff] %v447_v4  ;;  %450 = vst [vmem:[%s2392_s27 + $0x28] sm:$0xff] %v449_v5  ;;  %v451_v6 = vld [vmem:[%s2387_s26 + $0x60] sm:$0xff]  ;;  %v453_v7 = vld [vmem:[%s2387_s26 + $0x70] sm:$0xff] }
  0x13   : > { %v455_v8 = vld [vmem:[%s2387_s26 + $0x80] sm:$0xff]  ;;  %452 = vst [vmem:[%s2392_s27 + $0x30] sm:$0xff] %v451_v6  ;;  %454 = vst [vmem:[%s2392_s27 + $0x38] sm:$0xff] %v453_v7  ;;  %v457_v9 = vld [vmem:[%s2387_s26 + $0x90] sm:$0xff] }
  0x14   : > { %456 = vst [vmem:[%s2392_s27 + $0x40] sm:$0xff] %v455_v8  ;;  %v459_v10 = vld [vmem:[%s2387_s26 + $0xa0] sm:$0xff]  ;;  %v461_v11 = vld [vmem:[%s2387_s26 + $0xb0] sm:$0xff]  ;;  %458 = vst [vmem:[%s2392_s27 + $0x48] sm:$0xff] %v457_v9 }
  0x15   : > { %460 = vst [vmem:[%s2392_s27 + $0x50] sm:$0xff] %v459_v10  ;;  %462 = vst [vmem:[%s2392_s27 + $0x58] sm:$0xff] %v461_v11  ;;  %v463_v12 = vld [vmem:[%s2387_s26 + $0xc0] sm:$0xff]  ;;  %v465_v13 = vld [vmem:[%s2387_s26 + $0xd0] sm:$0xff] }
  0x16   : > { %v467_v14 = vld [vmem:[%s2387_s26 + $0xe0] sm:$0xff]  ;;  %464 = vst [vmem:[%s2392_s27 + $0x60] sm:$0xff] %v463_v12  ;;  %466 = vst [vmem:[%s2392_s27 + $0x68] sm:$0xff] %v465_v13  ;;  %v469_v15 = vld [vmem:[%s2387_s26 + $0xf0] sm:$0xff] }
  0x17   : > { %468 = vst [vmem:[%s2392_s27 + $0x70] sm:$0xff] %v467_v14  ;;  %v471_v16 = vld [vmem:[%s2387_s26 + $0x100] sm:$0xff]  ;;  %v473_v17 = vld [vmem:[%s2387_s26 + $0x110] sm:$0xff]  ;;  %470 = vst [vmem:[%s2392_s27 + $0x78] sm:$0xff] %v469_v15 }
  0x18   : > { %472 = vst [vmem:[%s2392_s27 + $0x80] sm:$0xff] %v471_v16  ;;  %474 = vst [vmem:[%s2392_s27 + $0x88] sm:$0xff] %v473_v17  ;;  %v475_v18 = vld [vmem:[%s2387_s26 + $0x120] sm:$0xff]  ;;  %v477_v19 = vld [vmem:[%s2387_s26 + $0x130] sm:$0xff] }
  0x19   : > { %v479_v20 = vld [vmem:[%s2387_s26 + $0x140] sm:$0xff]  ;;  %476 = vst [vmem:[%s2392_s27 + $0x90] sm:$0xff] %v475_v18  ;;  %478 = vst [vmem:[%s2392_s27 + $0x98] sm:$0xff] %v477_v19  ;;  %v481_v21 = vld [vmem:[%s2387_s26 + $0x150] sm:$0xff] }
  0x1a   : > { %480 = vst [vmem:[%s2392_s27 + $0xa0] sm:$0xff] %v479_v20  ;;  %v483_v22 = vld [vmem:[%s2387_s26 + $0x160] sm:$0xff]  ;;  %v485_v23 = vld [vmem:[%s2387_s26 + $0x170] sm:$0xff]  ;;  %482 = vst [vmem:[%s2392_s27 + $0xa8] sm:$0xff] %v481_v21 }
  0x1b   : > { %484 = vst [vmem:[%s2392_s27 + $0xb0] sm:$0xff] %v483_v22  ;;  %486 = vst [vmem:[%s2392_s27 + $0xb8] sm:$0xff] %v485_v23  ;;  %v487_v24 = vld [vmem:[%s2387_s26 + $0x180] sm:$0xff]  ;;  %v489_v25 = vld [vmem:[%s2387_s26 + $0x190] sm:$0xff] }
  0x1c   : > { %v491_v26 = vld [vmem:[%s2387_s26 + $0x1a0] sm:$0xff]  ;;  %488 = vst [vmem:[%s2392_s27 + $0xc0] sm:$0xff] %v487_v24  ;;  %490 = vst [vmem:[%s2392_s27 + $0xc8] sm:$0xff] %v489_v25  ;;  %v493_v27 = vld [vmem:[%s2387_s26 + $0x1b0] sm:$0xff] }
  0x1d   : > { %492 = vst [vmem:[%s2392_s27 + $0xd0] sm:$0xff] %v491_v26  ;;  %v495_v28 = vld [vmem:[%s2387_s26 + $0x1c0] sm:$0xff]  ;;  %v497_v29 = vld [vmem:[%s2387_s26 + $0x1d0] sm:$0xff]  ;;  %494 = vst [vmem:[%s2392_s27 + $0xd8] sm:$0xff] %v493_v27 }
  0x1e   : > { %496 = vst [vmem:[%s2392_s27 + $0xe0] sm:$0xff] %v495_v28  ;;  %498 = vst [vmem:[%s2392_s27 + $0xe8] sm:$0xff] %v497_v29  ;;  %v499_v30 = vld [vmem:[%s2387_s26 + $0x1e0] sm:$0xff]  ;;  %v501_v31 = vld [vmem:[%s2387_s26 + $0x1f0] sm:$0xff] }
  0x1f   : > { %v503_v32 = vld [vmem:[%s2387_s26 + $0x200] sm:$0xff]  ;;  %500 = vst [vmem:[%s2392_s27 + $0xf0] sm:$0xff] %v499_v30  ;;  %502 = vst [vmem:[%s2392_s27 + $0xf8] sm:$0xff] %v501_v31  ;;  %v505_v33 = vld [vmem:[%s2387_s26 + $0x210] sm:$0xff] }
  0x20   : > { %504 = vst [vmem:[%s2392_s27 + $0x100] sm:$0xff] %v503_v32  ;;  %v507_v34 = vld [vmem:[%s2387_s26 + $0x220] sm:$0xff]  ;;  %v509_v35 = vld [vmem:[%s2387_s26 + $0x230] sm:$0xff]  ;;  %506 = vst [vmem:[%s2392_s27 + $0x108] sm:$0xff] %v505_v33 }
  0x21   : > { %508 = vst [vmem:[%s2392_s27 + $0x110] sm:$0xff] %v507_v34  ;;  %510 = vst [vmem:[%s2392_s27 + $0x118] sm:$0xff] %v509_v35  ;;  %v511_v36 = vld [vmem:[%s2387_s26 + $0x240] sm:$0xff]  ;;  %v513_v37 = vld [vmem:[%s2387_s26 + $0x250] sm:$0xff] }
  0x22   : > { %v515_v38 = vld [vmem:[%s2387_s26 + $0x260] sm:$0xff]  ;;  %512 = vst [vmem:[%s2392_s27 + $0x120] sm:$0xff] %v511_v36  ;;  %514 = vst [vmem:[%s2392_s27 + $0x128] sm:$0xff] %v513_v37  ;;  %v517_v39 = vld [vmem:[%s2387_s26 + $0x270] sm:$0xff] }
  0x23   : > { %516 = vst [vmem:[%s2392_s27 + $0x130] sm:$0xff] %v515_v38  ;;  %v519_v40 = vld [vmem:[%s2387_s26 + $0x280] sm:$0xff]  ;;  %v521_v41 = vld [vmem:[%s2387_s26 + $0x290] sm:$0xff]  ;;  %518 = vst [vmem:[%s2392_s27 + $0x138] sm:$0xff] %v517_v39 }
  0x24   : > { %520 = vst [vmem:[%s2392_s27 + $0x140] sm:$0xff] %v519_v40  ;;  %522 = vst [vmem:[%s2392_s27 + $0x148] sm:$0xff] %v521_v41  ;;  %v523_v42 = vld [vmem:[%s2387_s26 + $0x2a0] sm:$0xff]  ;;  %v525_v43 = vld [vmem:[%s2387_s26 + $0x2b0] sm:$0xff] }
  0x25   : > { %v527_v44 = vld [vmem:[%s2387_s26 + $0x2c0] sm:$0xff]  ;;  %524 = vst [vmem:[%s2392_s27 + $0x150] sm:$0xff] %v523_v42  ;;  %526 = vst [vmem:[%s2392_s27 + $0x158] sm:$0xff] %v525_v43  ;;  %v529_v45 = vld [vmem:[%s2387_s26 + $0x2d0] sm:$0xff] }
  0x26   : > { %528 = vst [vmem:[%s2392_s27 + $0x160] sm:$0xff] %v527_v44  ;;  %v531_v46 = vld [vmem:[%s2387_s26 + $0x2e0] sm:$0xff]  ;;  %v533_v47 = vld [vmem:[%s2387_s26 + $0x2f0] sm:$0xff]  ;;  %530 = vst [vmem:[%s2392_s27 + $0x168] sm:$0xff] %v529_v45 }
  0x27   : > { %532 = vst [vmem:[%s2392_s27 + $0x170] sm:$0xff] %v531_v46  ;;  %534 = vst [vmem:[%s2392_s27 + $0x178] sm:$0xff] %v533_v47  ;;  %v535_v48 = vld [vmem:[%s2387_s26 + $0x300] sm:$0xff]  ;;  %v537_v49 = vld [vmem:[%s2387_s26 + $0x310] sm:$0xff] }
  0x28   : > { %v539_v50 = vld [vmem:[%s2387_s26 + $0x320] sm:$0xff]  ;;  %536 = vst [vmem:[%s2392_s27 + $0x180] sm:$0xff] %v535_v48  ;;  %538 = vst [vmem:[%s2392_s27 + $0x188] sm:$0xff] %v537_v49  ;;  %v541_v51 = vld [vmem:[%s2387_s26 + $0x330] sm:$0xff] }
  0x29   : > { %540 = vst [vmem:[%s2392_s27 + $0x190] sm:$0xff] %v539_v50  ;;  %v543_v52 = vld [vmem:[%s2387_s26 + $0x340] sm:$0xff]  ;;  %v545_v53 = vld [vmem:[%s2387_s26 + $0x350] sm:$0xff]  ;;  %542 = vst [vmem:[%s2392_s27 + $0x198] sm:$0xff] %v541_v51 }
  0x2a   : > { %544 = vst [vmem:[%s2392_s27 + $0x1a0] sm:$0xff] %v543_v52  ;;  %546 = vst [vmem:[%s2392_s27 + $0x1a8] sm:$0xff] %v545_v53  ;;  %v547_v54 = vld [vmem:[%s2387_s26 + $0x360] sm:$0xff]  ;;  %v549_v55 = vld [vmem:[%s2387_s26 + $0x370] sm:$0xff] }
  0x2b   : > { %v551_v56 = vld [vmem:[%s2387_s26 + $0x380] sm:$0xff]  ;;  %548 = vst [vmem:[%s2392_s27 + $0x1b0] sm:$0xff] %v547_v54  ;;  %550 = vst [vmem:[%s2392_s27 + $0x1b8] sm:$0xff] %v549_v55  ;;  %v553_v57 = vld [vmem:[%s2387_s26 + $0x390] sm:$0xff] }
  0x2c   : > { %552 = vst [vmem:[%s2392_s27 + $0x1c0] sm:$0xff] %v551_v56  ;;  %v555_v58 = vld [vmem:[%s2387_s26 + $0x3a0] sm:$0xff]  ;;  %v557_v59 = vld [vmem:[%s2387_s26 + $0x3b0] sm:$0xff]  ;;  %554 = vst [vmem:[%s2392_s27 + $0x1c8] sm:$0xff] %v553_v57 }
  0x2d   : > { %556 = vst [vmem:[%s2392_s27 + $0x1d0] sm:$0xff] %v555_v58  ;;  %558 = vst [vmem:[%s2392_s27 + $0x1d8] sm:$0xff] %v557_v59  ;;  %v559_v60 = vld [vmem:[%s2387_s26 + $0x3c0] sm:$0xff]  ;;  %v561_v61 = vld [vmem:[%s2387_s26 + $0x3d0] sm:$0xff] }
  0x2e   : > { %v563_v62 = vld [vmem:[%s2387_s26 + $0x3e0] sm:$0xff]  ;;  %560 = vst [vmem:[%s2392_s27 + $0x1e0] sm:$0xff] %v559_v60  ;;  %562 = vst [vmem:[%s2392_s27 + $0x1e8] sm:$0xff] %v561_v61  ;;  %v565_v63 = vld [vmem:[%s2387_s26 + $0x3f0] sm:$0xff] }
  0x2f   : > { %564 = vst [vmem:[%s2392_s27 + $0x1f0] sm:$0xff] %v563_v62  ;;  %v567_v0 = vld [vmem:[%s2387_s26 + $0x400] sm:$0xff]  ;;  %v569_v1 = vld [vmem:[%s2387_s26 + $0x410] sm:$0xff]  ;;  %566 = vst [vmem:[%s2392_s27 + $0x1f8] sm:$0xff] %v565_v63 }
  0x30   : > { %568 = vst [vmem:[%s2392_s27 + $0x200] sm:$0xff] %v567_v0  ;;  %570 = vst [vmem:[%s2392_s27 + $0x208] sm:$0xff] %v569_v1  ;;  %v571_v2 = vld [vmem:[%s2387_s26 + $0x420] sm:$0xff]  ;;  %v573_v3 = vld [vmem:[%s2387_s26 + $0x430] sm:$0xff] }
  0x31   : > { %v575_v4 = vld [vmem:[%s2387_s26 + $0x440] sm:$0xff]  ;;  %572 = vst [vmem:[%s2392_s27 + $0x210] sm:$0xff] %v571_v2  ;;  %574 = vst [vmem:[%s2392_s27 + $0x218] sm:$0xff] %v573_v3  ;;  %v577_v5 = vld [vmem:[%s2387_s26 + $0x450] sm:$0xff] }
  0x32   : > { %576 = vst [vmem:[%s2392_s27 + $0x220] sm:$0xff] %v575_v4  ;;  %v579_v6 = vld [vmem:[%s2387_s26 + $0x460] sm:$0xff]  ;;  %v581_v7 = vld [vmem:[%s2387_s26 + $0x470] sm:$0xff]  ;;  %578 = vst [vmem:[%s2392_s27 + $0x228] sm:$0xff] %v577_v5 }
  0x33   : > { %580 = vst [vmem:[%s2392_s27 + $0x230] sm:$0xff] %v579_v6  ;;  %582 = vst [vmem:[%s2392_s27 + $0x238] sm:$0xff] %v581_v7  ;;  %v583_v8 = vld [vmem:[%s2387_s26 + $0x480] sm:$0xff]  ;;  %v585_v9 = vld [vmem:[%s2387_s26 + $0x490] sm:$0xff] }
  0x34   : > { %v587_v10 = vld [vmem:[%s2387_s26 + $0x4a0] sm:$0xff]  ;;  %584 = vst [vmem:[%s2392_s27 + $0x240] sm:$0xff] %v583_v8  ;;  %586 = vst [vmem:[%s2392_s27 + $0x248] sm:$0xff] %v585_v9  ;;  %v589_v11 = vld [vmem:[%s2387_s26 + $0x4b0] sm:$0xff] }
  0x35   : > { %588 = vst [vmem:[%s2392_s27 + $0x250] sm:$0xff] %v587_v10  ;;  %v591_v12 = vld [vmem:[%s2387_s26 + $0x4c0] sm:$0xff]  ;;  %v593_v13 = vld [vmem:[%s2387_s26 + $0x4d0] sm:$0xff]  ;;  %590 = vst [vmem:[%s2392_s27 + $0x258] sm:$0xff] %v589_v11 }
  0x36   : > { %592 = vst [vmem:[%s2392_s27 + $0x260] sm:$0xff] %v591_v12  ;;  %594 = vst [vmem:[%s2392_s27 + $0x268] sm:$0xff] %v593_v13  ;;  %v595_v14 = vld [vmem:[%s2387_s26 + $0x4e0] sm:$0xff]  ;;  %v597_v15 = vld [vmem:[%s2387_s26 + $0x4f0] sm:$0xff] }
  0x37   : > { %v599_v16 = vld [vmem:[%s2387_s26 + $0x500] sm:$0xff]  ;;  %596 = vst [vmem:[%s2392_s27 + $0x270] sm:$0xff] %v595_v14  ;;  %598 = vst [vmem:[%s2392_s27 + $0x278] sm:$0xff] %v597_v15  ;;  %v601_v17 = vld [vmem:[%s2387_s26 + $0x510] sm:$0xff] }
  0x38   : > { %600 = vst [vmem:[%s2392_s27 + $0x280] sm:$0xff] %v599_v16  ;;  %v603_v18 = vld [vmem:[%s2387_s26 + $0x520] sm:$0xff]  ;;  %v605_v19 = vld [vmem:[%s2387_s26 + $0x530] sm:$0xff]  ;;  %602 = vst [vmem:[%s2392_s27 + $0x288] sm:$0xff] %v601_v17 }
  0x39   : > { %604 = vst [vmem:[%s2392_s27 + $0x290] sm:$0xff] %v603_v18  ;;  %606 = vst [vmem:[%s2392_s27 + $0x298] sm:$0xff] %v605_v19  ;;  %v607_v20 = vld [vmem:[%s2387_s26 + $0x540] sm:$0xff]  ;;  %v609_v21 = vld [vmem:[%s2387_s26 + $0x550] sm:$0xff] }
  0x3a   : > { %v611_v22 = vld [vmem:[%s2387_s26 + $0x560] sm:$0xff]  ;;  %608 = vst [vmem:[%s2392_s27 + $0x2a0] sm:$0xff] %v607_v20  ;;  %610 = vst [vmem:[%s2392_s27 + $0x2a8] sm:$0xff] %v609_v21  ;;  %v613_v23 = vld [vmem:[%s2387_s26 + $0x570] sm:$0xff] }
  0x3b   : > { %612 = vst [vmem:[%s2392_s27 + $0x2b0] sm:$0xff] %v611_v22  ;;  %v615_v24 = vld [vmem:[%s2387_s26 + $0x580] sm:$0xff]  ;;  %v617_v25 = vld [vmem:[%s2387_s26 + $0x590] sm:$0xff]  ;;  %614 = vst [vmem:[%s2392_s27 + $0x2b8] sm:$0xff] %v613_v23 }
  0x3c   : > { %616 = vst [vmem:[%s2392_s27 + $0x2c0] sm:$0xff] %v615_v24  ;;  %618 = vst [vmem:[%s2392_s27 + $0x2c8] sm:$0xff] %v617_v25  ;;  %v619_v26 = vld [vmem:[%s2387_s26 + $0x5a0] sm:$0xff]  ;;  %v621_v27 = vld [vmem:[%s2387_s26 + $0x5b0] sm:$0xff] }
  0x3d   : > { %v623_v28 = vld [vmem:[%s2387_s26 + $0x5c0] sm:$0xff]  ;;  %620 = vst [vmem:[%s2392_s27 + $0x2d0] sm:$0xff] %v619_v26  ;;  %622 = vst [vmem:[%s2392_s27 + $0x2d8] sm:$0xff] %v621_v27  ;;  %v625_v29 = vld [vmem:[%s2387_s26 + $0x5d0] sm:$0xff] }
  0x3e   : > { %624 = vst [vmem:[%s2392_s27 + $0x2e0] sm:$0xff] %v623_v28  ;;  %v627_v30 = vld [vmem:[%s2387_s26 + $0x5e0] sm:$0xff]  ;;  %v629_v31 = vld [vmem:[%s2387_s26 + $0x5f0] sm:$0xff]  ;;  %626 = vst [vmem:[%s2392_s27 + $0x2e8] sm:$0xff] %v625_v29 }
  0x3f   : > { %628 = vst [vmem:[%s2392_s27 + $0x2f0] sm:$0xff] %v627_v30  ;;  %630 = vst [vmem:[%s2392_s27 + $0x2f8] sm:$0xff] %v629_v31  ;;  %v631_v32 = vld [vmem:[%s2387_s26 + $0x600] sm:$0xff]  ;;  %v633_v33 = vld [vmem:[%s2387_s26 + $0x610] sm:$0xff] }
  0x40   : > { %v635_v34 = vld [vmem:[%s2387_s26 + $0x620] sm:$0xff]  ;;  %632 = vst [vmem:[%s2392_s27 + $0x300] sm:$0xff] %v631_v32  ;;  %634 = vst [vmem:[%s2392_s27 + $0x308] sm:$0xff] %v633_v33  ;;  %v637_v35 = vld [vmem:[%s2387_s26 + $0x630] sm:$0xff] }
  0x41   : > { %636 = vst [vmem:[%s2392_s27 + $0x310] sm:$0xff] %v635_v34  ;;  %v639_v36 = vld [vmem:[%s2387_s26 + $0x640] sm:$0xff]  ;;  %v641_v37 = vld [vmem:[%s2387_s26 + $0x650] sm:$0xff]  ;;  %638 = vst [vmem:[%s2392_s27 + $0x318] sm:$0xff] %v637_v35 }
  0x42   : > { %640 = vst [vmem:[%s2392_s27 + $0x320] sm:$0xff] %v639_v36  ;;  %642 = vst [vmem:[%s2392_s27 + $0x328] sm:$0xff] %v641_v37  ;;  %v643_v38 = vld [vmem:[%s2387_s26 + $0x660] sm:$0xff]  ;;  %v645_v39 = vld [vmem:[%s2387_s26 + $0x670] sm:$0xff] }
  0x43   : > { %v647_v40 = vld [vmem:[%s2387_s26 + $0x680] sm:$0xff]  ;;  %644 = vst [vmem:[%s2392_s27 + $0x330] sm:$0xff] %v643_v38  ;;  %646 = vst [vmem:[%s2392_s27 + $0x338] sm:$0xff] %v645_v39  ;;  %v649_v41 = vld [vmem:[%s2387_s26 + $0x690] sm:$0xff] }
  0x44   : > { %648 = vst [vmem:[%s2392_s27 + $0x340] sm:$0xff] %v647_v40  ;;  %v651_v42 = vld [vmem:[%s2387_s26 + $0x6a0] sm:$0xff]  ;;  %v653_v43 = vld [vmem:[%s2387_s26 + $0x6b0] sm:$0xff]  ;;  %650 = vst [vmem:[%s2392_s27 + $0x348] sm:$0xff] %v649_v41 }
  0x45   : > { %652 = vst [vmem:[%s2392_s27 + $0x350] sm:$0xff] %v651_v42  ;;  %654 = vst [vmem:[%s2392_s27 + $0x358] sm:$0xff] %v653_v43  ;;  %v655_v44 = vld [vmem:[%s2387_s26 + $0x6c0] sm:$0xff]  ;;  %v657_v45 = vld [vmem:[%s2387_s26 + $0x6d0] sm:$0xff] }
  0x46   : > { %v659_v46 = vld [vmem:[%s2387_s26 + $0x6e0] sm:$0xff]  ;;  %656 = vst [vmem:[%s2392_s27 + $0x360] sm:$0xff] %v655_v44  ;;  %658 = vst [vmem:[%s2392_s27 + $0x368] sm:$0xff] %v657_v45  ;;  %v661_v47 = vld [vmem:[%s2387_s26 + $0x6f0] sm:$0xff] }
  0x47   : > { %660 = vst [vmem:[%s2392_s27 + $0x370] sm:$0xff] %v659_v46  ;;  %v663_v48 = vld [vmem:[%s2387_s26 + $0x700] sm:$0xff]  ;;  %v665_v49 = vld [vmem:[%s2387_s26 + $0x710] sm:$0xff]  ;;  %662 = vst [vmem:[%s2392_s27 + $0x378] sm:$0xff] %v661_v47 }
  0x48   : > { %664 = vst [vmem:[%s2392_s27 + $0x380] sm:$0xff] %v663_v48  ;;  %666 = vst [vmem:[%s2392_s27 + $0x388] sm:$0xff] %v665_v49  ;;  %v667_v50 = vld [vmem:[%s2387_s26 + $0x720] sm:$0xff]  ;;  %v669_v51 = vld [vmem:[%s2387_s26 + $0x730] sm:$0xff] }
  0x49   : > { %v671_v52 = vld [vmem:[%s2387_s26 + $0x740] sm:$0xff]  ;;  %668 = vst [vmem:[%s2392_s27 + $0x390] sm:$0xff] %v667_v50  ;;  %670 = vst [vmem:[%s2392_s27 + $0x398] sm:$0xff] %v669_v51  ;;  %v673_v53 = vld [vmem:[%s2387_s26 + $0x750] sm:$0xff] }
  0x4a   : > { %672 = vst [vmem:[%s2392_s27 + $0x3a0] sm:$0xff] %v671_v52  ;;  %v675_v54 = vld [vmem:[%s2387_s26 + $0x760] sm:$0xff]  ;;  %v677_v55 = vld [vmem:[%s2387_s26 + $0x770] sm:$0xff]  ;;  %674 = vst [vmem:[%s2392_s27 + $0x3a8] sm:$0xff] %v673_v53 }
  0x4b   : > { %676 = vst [vmem:[%s2392_s27 + $0x3b0] sm:$0xff] %v675_v54  ;;  %678 = vst [vmem:[%s2392_s27 + $0x3b8] sm:$0xff] %v677_v55  ;;  %v679_v56 = vld [vmem:[%s2387_s26 + $0x780] sm:$0xff]  ;;  %v681_v57 = vld [vmem:[%s2387_s26 + $0x790] sm:$0xff] }
  0x4c   : > { %v683_v58 = vld [vmem:[%s2387_s26 + $0x7a0] sm:$0xff]  ;;  %680 = vst [vmem:[%s2392_s27 + $0x3c0] sm:$0xff] %v679_v56  ;;  %682 = vst [vmem:[%s2392_s27 + $0x3c8] sm:$0xff] %v681_v57  ;;  %v685_v59 = vld [vmem:[%s2387_s26 + $0x7b0] sm:$0xff] }
  0x4d   : > { %684 = vst [vmem:[%s2392_s27 + $0x3d0] sm:$0xff] %v683_v58  ;;  %v687_v60 = vld [vmem:[%s2387_s26 + $0x7c0] sm:$0xff]  ;;  %v689_v61 = vld [vmem:[%s2387_s26 + $0x7d0] sm:$0xff]  ;;  %686 = vst [vmem:[%s2392_s27 + $0x3d8] sm:$0xff] %v685_v59 }
  0x4e   : > { %688 = vst [vmem:[%s2392_s27 + $0x3e0] sm:$0xff] %v687_v60  ;;  %690 = vst [vmem:[%s2392_s27 + $0x3e8] sm:$0xff] %v689_v61  ;;  %v691_v62 = vld [vmem:[%s2387_s26 + $0x7e0] sm:$0xff]  ;;  %v693_v63 = vld [vmem:[%s2387_s26 + $0x7f0] sm:$0xff] }
  0x4f   : > { %692 = vst [vmem:[%s2392_s27 + $0x3f0] sm:$0xff] %v691_v62  ;;  %694 = vst [vmem:[%s2392_s27 + $0x3f8] sm:$0xff] %v693_v63 }
  0x50 PF: > { %p1908_p6 = scmp.ge.s32.totalorder %s2319_s16, 1  ;;  %p707_p7 = scmp.lt.s32.totalorder %s2319_s16, 3 }
  0x52   : > { %p708_p8 = pnand %p1908_p6, %p707_p7 }
  0x53   : > { %s714_s28 = sand.u32 (!%p708_p8), 1, %s2303_s12   ;;  %s1910_s6 = sshll.u32 (!%p708_p8), %s2311_s14, 1 }
  0x54   : > { %711 = sbr.rel (%p708_p8) target bundleno = 445 (0x1bd), region = 66  ;;  %s1909_s29 = sshll.u32 (!%p708_p8), %s714_s28, 10 }
  0x55   : > { %s2657_s5 = scalar_lea.vmem (!%p708_p8), [#allocation3], %s1909_s29  ;;  %p743_p9 = scmp.lt.s32.totalorder (!%p708_p8), %s1910_s6, 3 }
  0x59   : > { %v896_v0 = vlaneseq  ;;  %v2321_v1 = vmov 1966171168   ;;  %v2653_v3 = vld [vmem:[%s2839_s0] sm:$0xff]  ;;  %v2092_v8 = vld [vmem:[%s2657_s5 + $0x70] ss:$8 sps:$4 sm:$0xff]   ;;  %s2850_s6 = smov (!%p743_p9, %s1910_s6), 3 }
  0x5a   : > { %v894_v2 = vunpack.c.l.s4 %v2321_v1  ;;  %v2088_v5 = vld [vmem:[%s2657_s5 + $0x74] ss:$8 sps:$4 sm:$0xff]   ;;  %v2093_v9 = vld [vmem:[%s2657_s5 + $0x170] ss:$8 sps:$4 sm:$0xff]   ;;  %v2094_v11 = vld [vmem:[%s2657_s5 + $0x64] ss:$8 sps:$4 sm:$0xff]   ;;  %v892_v1 = vcombine.high %v2653_v3, %v2653_v3  ;;  %s745_s9 = scalar_lea.vmem %s2841_s2, %s2850_s6  ;;  %s750_s12 = scalar_lea.vmem %s2842_s3, %s2850_s6 }
  0x5b   : > { %v2655_v4 = vshrl.u32 %v896_v0, 7  ;;  %v2090_v7 = vld [vmem:[%s2657_s5 + $0x174] ss:$8 sps:$4 sm:$0xff]   ;;  %1589 = vmatprep.subr.bf16.mxu0 %v2088_v5  ;;  %v2096_v12 = vld [vmem:[%s2657_s5 + $0x164] ss:$8 sps:$4 sm:$0xff]  }
  0x5c   : > { %v895_v6 = vunpack.c.0.s8 %v894_v2  ;;  %1630 = vmatprep.subr.bf16.mxu1 %v2090_v7  ;;  %1590 = vmatpush1.bf16.msra.mxu0 %v2092_v8  ;;  %v2098_v13 = vld [vmem:[%s2657_s5 + $0x60] ss:$8 sps:$4 sm:$0xff]   ;;  %v2100_v16 = vld [vmem:[%s2657_s5 + $0x54] ss:$8 sps:$4 sm:$0xff]   ;;  %v2104_v19 = vld [vmem:[%s2657_s5 + $0x50] ss:$8 sps:$4 sm:$0xff]  }
  0x5d   : > { %1631 = vmatpush1.bf16.msra.mxu1 %v2093_v9  ;;  %1591 = vmatprep.subr.bf16.mxu0 %v2094_v11  ;;  %v2099_v15 = vld [vmem:[%s2657_s5 + $0x160] ss:$8 sps:$4 sm:$0xff]   ;;  %v2102_v18 = vld [vmem:[%s2657_s5 + $0x154] ss:$8 sps:$4 sm:$0xff]   ;;  %v2105_v20 = vld [vmem:[%s2657_s5 + $0x150] ss:$8 sps:$4 sm:$0xff]  }
  0x5e   : > { %v2664_v10 = vsub.s32 %v895_v6, %v2655_v4  ;;  %1632 = vmatprep.subr.bf16.mxu1 %v2096_v12  ;;  %v2106_v21 = vld [vmem:[%s2657_s5 + $0x44] ss:$8 sps:$4 sm:$0xff]   ;;  %v2110_v25 = vld [vmem:[%s2657_s5 + $0x40] ss:$8 sps:$4 sm:$0xff]   ;;  %v2112_v27 = vld [vmem:[%s2657_s5 + $0x34] ss:$8 sps:$4 sm:$0xff]  }
  0x5f   : > { %v2108_v23 = vld [vmem:[%s2657_s5 + $0x144] ss:$8 sps:$4 sm:$0xff]   ;;  %v2111_v26 = vld [vmem:[%s2657_s5 + $0x140] ss:$8 sps:$4 sm:$0xff]   ;;  %v2114_v28 = vld [vmem:[%s2657_s5 + $0x134] ss:$8 sps:$4 sm:$0xff]  }
  0x60   : > { %v2671_v14 = vrot.slane %v2653_v3, %v2664_v10  ;;  %1592 = vmatpush1.bf16.msra.mxu0 %v2098_v13  ;;  %v2116_v29 = vld [vmem:[%s2657_s5 + $0x30] ss:$8 sps:$4 sm:$0xff]   ;;  %v2118_v31 = vld [vmem:[%s2657_s5 + $0x24] ss:$8 sps:$4 sm:$0xff]   ;;  %v2122_v33 = vld [vmem:[%s2657_s5 + $0x20] ss:$8 sps:$4 sm:$0xff]   ;;  %v2730_v8 = vrot.slane %v892_v1, %v2664_v10 }
  0x61   : > { %1633 = vmatpush1.bf16.msra.mxu1 %v2099_v15  ;;  %1593 = vmatprep.subr.bf16.mxu0 %v2100_v16  ;;  %v2117_v30 = vld [vmem:[%s2657_s5 + $0x130] ss:$8 sps:$4 sm:$0xff]   ;;  %v2120_v32 = vld [vmem:[%s2657_s5 + $0x124] ss:$8 sps:$4 sm:$0xff]   ;;  %v2123_v34 = vld [vmem:[%s2657_s5 + $0x120] ss:$8 sps:$4 sm:$0xff]  }
  0x62   : > { %v907_v17 = vcombine.high %v2671_v14, %v2671_v14  ;;  %1634 = vmatprep.subr.bf16.mxu1 %v2102_v18  ;;  %v2124_v35 = vld [vmem:[%s2657_s5 + $0x14] ss:$8 sps:$4 sm:$0xff]   ;;  %v2128_v37 = vld [vmem:[%s2657_s5 + $0x10] ss:$8 sps:$4 sm:$0xff]   ;;  %v2130_v39 = vld [vmem:[%s2657_s5 + $0x4] ss:$8 sps:$4 sm:$0xff]   ;;  %v908_v13 = vcombine.high %v2730_v8, %v2730_v8 }
  0x63   : > { %v2126_v36 = vld [vmem:[%s2657_s5 + $0x114] ss:$8 sps:$4 sm:$0xff]   ;;  %v2129_v38 = vld [vmem:[%s2657_s5 + $0x110] ss:$8 sps:$4 sm:$0xff]   ;;  %v2132_v40 = vld [vmem:[%s2657_s5 + $0x104] ss:$8 sps:$4 sm:$0xff]  }
  0x64   : > { %v929_v22 = vrot.slane %v907_v17, %v2664_v10  ;;  %1594 = vmatpush1.bf16.msra.mxu0 %v2104_v19  ;;  %v2134_v41 = vld [vmem:[%s2657_s5] ss:$8 sps:$4 sm:$0xff]   ;;  %v2136_v43 = vld [vmem:[%s2657_s5 + $0xf4] ss:$8 sps:$4 sm:$0xff]   ;;  %v2140_v45 = vld [vmem:[%s2657_s5 + $0xf0] ss:$8 sps:$4 sm:$0xff]   ;;  %v915_v17 = vrot.slane %v2671_v14, %v2664_v10 }
  0x65   : > { %1635 = vmatpush1.bf16.msra.mxu1 %v2105_v20  ;;  %1595 = vmatprep.subr.bf16.mxu0 %v2106_v21  ;;  %v2135_v42 = vld [vmem:[%s2657_s5 + $0x100] ss:$8 sps:$4 sm:$0xff]   ;;  %v2138_v44 = vld [vmem:[%s2657_s5 + $0x1f4] ss:$8 sps:$4 sm:$0xff]   ;;  %v2141_v46 = vld [vmem:[%s2657_s5 + $0x1f0] ss:$8 sps:$4 sm:$0xff]   ;;  %v936_v20 = vrot.slane %v908_v13, %v2664_v10 }
  0x66   : > { %1621 = vmatprep.mubr.bf16.mxu0 %v929_v22  ;;  %v939_v24 = vcombine.high %v929_v22, %v929_v22  ;;  %1636 = vmatprep.subr.bf16.mxu1 %v2108_v23  ;;  %v2142_v47 = vld [vmem:[%s2657_s5 + $0xe4] ss:$8 sps:$4 sm:$0xff]   ;;  %v2146_v49 = vld [vmem:[%s2657_s5 + $0xe0] ss:$8 sps:$4 sm:$0xff]   ;;  %v2148_v51 = vld [vmem:[%s2657_s5 + $0xd4] ss:$8 sps:$4 sm:$0xff]   ;;  %v937_v21 = vcombine.high %v915_v17, %v915_v17 }
  0x67   : > { %v2144_v48 = vld [vmem:[%s2657_s5 + $0x1e4] ss:$8 sps:$4 sm:$0xff]   ;;  %v2147_v50 = vld [vmem:[%s2657_s5 + $0x1e0] ss:$8 sps:$4 sm:$0xff]   ;;  %v2150_v52 = vld [vmem:[%s2657_s5 + $0x1d4] ss:$8 sps:$4 sm:$0xff]  }
  0x68   : > { %1662 = vmatprep.mubr.bf16.mxu1 %v939_v24  ;;  %1596 = vmatpush1.bf16.msra.mxu0 %v2110_v25  ;;  %v2152_v53 = vld [vmem:[%s2657_s5 + $0xd0] ss:$8 sps:$4 sm:$0xff]   ;;  %v2154_v55 = vld [vmem:[%s2657_s5 + $0xc4] ss:$8 sps:$4 sm:$0xff]   ;;  %v2158_v57 = vld [vmem:[%s2657_s5 + $0xc0] ss:$8 sps:$4 sm:$0xff]   ;;  %v940_v25 = vcombine.high %v936_v20, %v936_v20 }
  0x69   : > { %1637 = vmatpush1.bf16.msra.mxu1 %v2111_v26  ;;  %1597 = vmatprep.subr.bf16.mxu0 %v2112_v27  ;;  %v2153_v54 = vld [vmem:[%s2657_s5 + $0x1d0] ss:$8 sps:$4 sm:$0xff]   ;;  %v2156_v56 = vld [vmem:[%s2657_s5 + $0x1c4] ss:$8 sps:$4 sm:$0xff]   ;;  %v2159_v58 = vld [vmem:[%s2657_s5 + $0x1c0] ss:$8 sps:$4 sm:$0xff]  }
  0x6a   : > { %1638 = vmatprep.subr.bf16.mxu1 %v2114_v28  ;;  %v2160_v59 = vld [vmem:[%s2657_s5 + $0xb4] ss:$8 sps:$4 sm:$0xff]   ;;  %v2164_v61 = vld [vmem:[%s2657_s5 + $0xb0] ss:$8 sps:$4 sm:$0xff]   ;;  %v2166_v63 = vld [vmem:[%s2657_s5 + $0xa4] ss:$8 sps:$4 sm:$0xff]  }
  0x6b   : > { %v2162_v60 = vld [vmem:[%s2657_s5 + $0x1b4] ss:$8 sps:$4 sm:$0xff]   ;;  %v2165_v62 = vld [vmem:[%s2657_s5 + $0x1b0] ss:$8 sps:$4 sm:$0xff]   ;;  %v2168_v0 = vld [vmem:[%s2657_s5 + $0x1a4] ss:$8 sps:$4 sm:$0xff]  }
  0x6c   : > { %1598 = vmatpush1.bf16.msra.mxu0 %v2116_v29  ;;  %v2170_v2 = vld [vmem:[%s2657_s5 + $0xa0] ss:$8 sps:$4 sm:$0xff]   ;;  %v2172_v6 = vld [vmem:[%s2657_s5 + $0x94] ss:$8 sps:$4 sm:$0xff]   ;;  %v2176_v9 = vld [vmem:[%s2657_s5 + $0x90] ss:$8 sps:$4 sm:$0xff]  }
  0x6d   : > { %1639 = vmatpush1.bf16.msra.mxu1 %v2117_v30  ;;  %1599 = vmatprep.subr.bf16.mxu0 %v2118_v31  ;;  %v2171_v5 = vld [vmem:[%s2657_s5 + $0x1a0] ss:$8 sps:$4 sm:$0xff]   ;;  %v2174_v7 = vld [vmem:[%s2657_s5 + $0x194] ss:$8 sps:$4 sm:$0xff]   ;;  %v2177_v11 = vld [vmem:[%s2657_s5 + $0x190] ss:$8 sps:$4 sm:$0xff]  }
  0x6e   : > { %1640 = vmatprep.subr.bf16.mxu1 %v2120_v32  ;;  %v2178_v3 = vld [vmem:[%s2657_s5 + $0x84] ss:$8 sps:$4 sm:$0xff]   ;;  %v2182_v15 = vld [vmem:[%s2657_s5 + $0x80] ss:$8 sps:$4 sm:$0xff]   ;;  %v2187_v18 = vld [vmem:[%s2657_s5 + $0x274] ss:$8 sps:$4 sm:$0xff]  }
  0x6f   : > { %v2180_v12 = vld [vmem:[%s2657_s5 + $0x184] ss:$8 sps:$4 sm:$0xff]   ;;  %v2183_v16 = vld [vmem:[%s2657_s5 + $0x180] ss:$8 sps:$4 sm:$0xff]   ;;  %v2190_v19 = vld [vmem:[%s2657_s5 + $0x374] ss:$8 sps:$4 sm:$0xff]  }
  0x70   : > { %1600 = vmatpush1.bf16.msra.mxu0 %v2122_v33  ;;  %v2185_v22 = vld [vmem:[%s2657_s5 + $0x270] ss:$8 sps:$4 sm:$0xff]   ;;  %v2193_v24 = vld [vmem:[%s2657_s5 + $0x264] ss:$8 sps:$4 sm:$0xff]   ;;  %v2191_v26 = vld [vmem:[%s2657_s5 + $0x260] ss:$8 sps:$4 sm:$0xff]  }
  0x71   : > { %1641 = vmatpush1.bf16.msra.mxu1 %v2123_v34  ;;  %1601 = vmatprep.subr.bf16.mxu0 %v2124_v35  ;;  %v2188_v23 = vld [vmem:[%s2657_s5 + $0x370] ss:$8 sps:$4 sm:$0xff]   ;;  %v2196_v14 = vld [vmem:[%s2657_s5 + $0x364] ss:$8 sps:$4 sm:$0xff]   ;;  %v2194_v27 = vld [vmem:[%s2657_s5 + $0x360] ss:$8 sps:$4 sm:$0xff]  }
  0x72   : > { %1642 = vmatprep.subr.bf16.mxu1 %v2126_v36  ;;  %v2199_v28 = vld [vmem:[%s2657_s5 + $0x254] ss:$8 sps:$4 sm:$0xff]   ;;  %v2197_v30 = vld [vmem:[%s2657_s5 + $0x250] ss:$8 sps:$4 sm:$0xff]   ;;  %v2205_v32 = vld [vmem:[%s2657_s5 + $0x244] ss:$8 sps:$4 sm:$0xff]  }
  0x73   : > { %v2202_v29 = vld [vmem:[%s2657_s5 + $0x354] ss:$8 sps:$4 sm:$0xff]   ;;  %v2200_v31 = vld [vmem:[%s2657_s5 + $0x350] ss:$8 sps:$4 sm:$0xff]   ;;  %v2208_v33 = vld [vmem:[%s2657_s5 + $0x344] ss:$8 sps:$4 sm:$0xff]  }
  0x74   : > { %1602 = vmatpush1.bf16.msra.mxu0 %v2128_v37  ;;  %v2203_v34 = vld [vmem:[%s2657_s5 + $0x240] ss:$8 sps:$4 sm:$0xff]   ;;  %v2211_v36 = vld [vmem:[%s2657_s5 + $0x234] ss:$8 sps:$4 sm:$0xff]   ;;  %v2256_v1 = vld [vmem:[%s2657_s5 + $0x3c4] ss:$8 sps:$4 sm:$0xff]  }
  0x75   : > { %1643 = vmatpush1.bf16.msra.mxu1 %v2129_v38  ;;  %1603 = vmatprep.subr.bf16.mxu0 %v2130_v39  ;;  %v2206_v35 = vld [vmem:[%s2657_s5 + $0x340] ss:$8 sps:$4 sm:$0xff]   ;;  %v2214_v37 = vld [vmem:[%s2657_s5 + $0x334] ss:$8 sps:$4 sm:$0xff]   ;;  %v2209_v38 = vld [vmem:[%s2657_s5 + $0x230] ss:$8 sps:$4 sm:$0xff]  }
  0x76   : > { %1644 = vmatprep.subr.bf16.mxu1 %v2132_v40  ;;  %v2212_v39 = vld [vmem:[%s2657_s5 + $0x330] ss:$8 sps:$4 sm:$0xff]   ;;  %v2217_v40 = vld [vmem:[%s2657_s5 + $0x224] ss:$8 sps:$4 sm:$0xff]   ;;  %v2263_v13 = vld [vmem:[%s2657_s5 + $0x2a0] ss:$8 sps:$4 sm:$0xff]  }
  0x78   : > { %1604 = vmatpush1.bf16.msra.mxu0 %v2134_v41  ;;  %v2220_v41 = vld [vmem:[%s2657_s5 + $0x324] ss:$8 sps:$4 sm:$0xff]  }
  0x79   : > { %1645 = vmatpush1.bf16.msra.mxu1 %v2135_v42  ;;  %1605 = vmatprep.subr.bf16.mxu0 %v2136_v43  ;;  %v2215_v42 = vld [vmem:[%s2657_s5 + $0x220] ss:$8 sps:$4 sm:$0xff]  }
  0x7a   : > { %1646 = vmatprep.subr.bf16.mxu1 %v2138_v44  ;;  %v2218_v43 = vld [vmem:[%s2657_s5 + $0x320] ss:$8 sps:$4 sm:$0xff]   ;;  %v2223_v44 = vld [vmem:[%s2657_s5 + $0x214] ss:$8 sps:$4 sm:$0xff]  }
  0x7c   : > { %1606 = vmatpush2.bf16.msra.mxu0 %v2140_v45  ;;  %v2226_v45 = vld [vmem:[%s2657_s5 + $0x314] ss:$8 sps:$4 sm:$0xff]  }
  0x7d   : > { %1647 = vmatpush2.bf16.msra.mxu1 %v2141_v46  ;;  %1607 = vmatprep.subr.bf16.mxu0 %v2142_v47  ;;  %v2221_v46 = vld [vmem:[%s2657_s5 + $0x210] ss:$8 sps:$4 sm:$0xff]  }
  0x7e   : > { %1648 = vmatprep.subr.bf16.mxu1 %v2144_v48  ;;  %v2224_v47 = vld [vmem:[%s2657_s5 + $0x310] ss:$8 sps:$4 sm:$0xff]   ;;  %v2229_v48 = vld [vmem:[%s2657_s5 + $0x204] ss:$8 sps:$4 sm:$0xff]  }
  0x80   : > { %1608 = vmatpush2.bf16.msra.mxu0 %v2146_v49  ;;  %v2232_v49 = vld [vmem:[%s2657_s5 + $0x304] ss:$8 sps:$4 sm:$0xff]  }
  0x81   : > { %1649 = vmatpush2.bf16.msra.mxu1 %v2147_v50  ;;  %1609 = vmatprep.subr.bf16.mxu0 %v2148_v51  ;;  %v2227_v50 = vld [vmem:[%s2657_s5 + $0x200] ss:$8 sps:$4 sm:$0xff]  }
  0x82   : > { %1650 = vmatprep.subr.bf16.mxu1 %v2150_v52  ;;  %v2230_v51 = vld [vmem:[%s2657_s5 + $0x300] ss:$8 sps:$4 sm:$0xff]   ;;  %v2235_v52 = vld [vmem:[%s2657_s5 + $0x2f4] ss:$8 sps:$4 sm:$0xff]  }
  0x84   : > { %1610 = vmatpush2.bf16.msra.mxu0 %v2152_v53  ;;  %v2238_v53 = vld [vmem:[%s2657_s5 + $0x3f4] ss:$8 sps:$4 sm:$0xff]  }
  0x85   : > { %1651 = vmatpush2.bf16.msra.mxu1 %v2153_v54  ;;  %1611 = vmatprep.subr.bf16.mxu0 %v2154_v55  ;;  %v2233_v54 = vld [vmem:[%s2657_s5 + $0x2f0] ss:$8 sps:$4 sm:$0xff]  }
  0x86   : > { %1652 = vmatprep.subr.bf16.mxu1 %v2156_v56  ;;  %v2236_v55 = vld [vmem:[%s2657_s5 + $0x3f0] ss:$8 sps:$4 sm:$0xff]   ;;  %v2241_v56 = vld [vmem:[%s2657_s5 + $0x2e4] ss:$8 sps:$4 sm:$0xff]  }
  0x88   : > { %1612 = vmatpush2.bf16.msra.mxu0 %v2158_v57  ;;  %v2244_v57 = vld [vmem:[%s2657_s5 + $0x3e4] ss:$8 sps:$4 sm:$0xff]  }
  0x89   : > { %1653 = vmatpush2.bf16.msra.mxu1 %v2159_v58  ;;  %1613 = vmatprep.subr.bf16.mxu0 %v2160_v59  ;;  %v2239_v58 = vld [vmem:[%s2657_s5 + $0x2e0] ss:$8 sps:$4 sm:$0xff]  }
  0x8a   : > { %1654 = vmatprep.subr.bf16.mxu1 %v2162_v60  ;;  %v2242_v59 = vld [vmem:[%s2657_s5 + $0x3e0] ss:$8 sps:$4 sm:$0xff]   ;;  %v2247_v60 = vld [vmem:[%s2657_s5 + $0x2d4] ss:$8 sps:$4 sm:$0xff]  }
  0x8c   : > { %1614 = vmatpush2.bf16.msra.mxu0 %v2164_v61  ;;  %v2250_v61 = vld [vmem:[%s2657_s5 + $0x3d4] ss:$8 sps:$4 sm:$0xff]  }
  0x8d   : > { %1655 = vmatpush2.bf16.msra.mxu1 %v2165_v62  ;;  %1615 = vmatprep.subr.bf16.mxu0 %v2166_v63  ;;  %v2245_v62 = vld [vmem:[%s2657_s5 + $0x2d0] ss:$8 sps:$4 sm:$0xff]  }
  0x8e   : > { %1656 = vmatprep.subr.bf16.mxu1 %v2168_v0  ;;  %v2248_v63 = vld [vmem:[%s2657_s5 + $0x3d0] ss:$8 sps:$4 sm:$0xff]   ;;  %v2253_v0 = vld [vmem:[%s2657_s5 + $0x2c4] ss:$8 sps:$4 sm:$0xff]  }
  0x90   : > { %1616 = vmatpush2.bf16.msra.mxu0 %v2170_v2  ;;  %v2251_v2 = vld [vmem:[%s2657_s5 + $0x2c0] ss:$8 sps:$4 sm:$0xff]  }
  0x91   : > { %1657 = vmatpush2.bf16.msra.mxu1 %v2171_v5  ;;  %1617 = vmatprep.subr.bf16.mxu0 %v2172_v6  ;;  %v2254_v5 = vld [vmem:[%s2657_s5 + $0x3c0] ss:$8 sps:$4 sm:$0xff]   ;;  %v2259_v6 = vld [vmem:[%s2657_s5 + $0x2b4] ss:$8 sps:$4 sm:$0xff]  }
  0x92   : > { %1658 = vmatprep.subr.bf16.mxu1 %v2174_v7  ;;  %v2262_v7 = vld [vmem:[%s2657_s5 + $0x3b4] ss:$8 sps:$4 sm:$0xff]  }
  0x94   : > { %1618 = vmatpush2.bf16.msra.mxu0 %v2176_v9  ;;  %v2257_v9 = vld [vmem:[%s2657_s5 + $0x2b0] ss:$8 sps:$4 sm:$0xff]  }
  0x95   : > { %1659 = vmatpush2.bf16.msra.mxu1 %v2177_v11  ;;  %1619 = vmatprep.subr.bf16.mxu0 %v2178_v3  ;;  %v2260_v11 = vld [vmem:[%s2657_s5 + $0x3b0] ss:$8 sps:$4 sm:$0xff]   ;;  %v2265_v3 = vld [vmem:[%s2657_s5 + $0x2a4] ss:$8 sps:$4 sm:$0xff]  }
  0x96   : > { %1660 = vmatprep.subr.bf16.mxu1 %v2180_v12  ;;  %v2268_v12 = vld [vmem:[%s2657_s5 + $0x3a4] ss:$8 sps:$4 sm:$0xff]  }
  0x98   : > { %1620 = vmatpush2.bf16.msra.mxu0 %v2182_v15  ;;  %v2266_v15 = vld [vmem:[%s2657_s5 + $0x3a0] ss:$8 sps:$4 sm:$0xff]  }
  0x99   : > { %1661 = vmatpush2.bf16.msra.mxu1 %v2183_v16  ;;  %1671 = vmatprep.subr.bf16.mxu0 %v2187_v18  ;;  %v2271_v16 = vld [vmem:[%s2657_s5 + $0x294] ss:$8 sps:$4 sm:$0xff]   ;;  %v2269_v18 = vld [vmem:[%s2657_s5 + $0x290] ss:$8 sps:$4 sm:$0xff]  }
  0x9a   : > { %1712 = vmatprep.subr.bf16.mxu1 %v2190_v19  ;;  %v2272_v19 = vld [vmem:[%s2657_s5 + $0x390] ss:$8 sps:$4 sm:$0xff]  }
  0x9b   : > { %1622 = vmatmul.mubr.bf16.vlgmr.msra.gmra.mxu0 %v915_v17  ;;  %v2274_v17 = vld [vmem:[%s2657_s5 + $0x394] ss:$8 sps:$4 sm:$0xff]  }
  0x9c   : > { %1663 = vmatmul.mubr.bf16.vlgmr.msra.gmra.mxu1 %v937_v21  ;;  %1672 = vmatpush1.bf16.msra.mxu0 %v2185_v22  ;;  %v2280_v21 = vld [vmem:[%s2657_s5 + $0x384] ss:$8 sps:$4 sm:$0xff]   ;;  %v922_v22 = vrot.slane %v2730_v8, %v2664_v10 }
  0x9d   : > { %1713 = vmatpush1.bf16.msra.mxu1 %v2188_v23  ;;  %1673 = vmatprep.subr.bf16.mxu0 %v2193_v24  ;;  %v2275_v23 = vld [vmem:[%s2657_s5 + $0x280] ss:$8 sps:$4 sm:$0xff]  }
  0x9e   : > { %1714 = vmatprep.subr.bf16.mxu1 %v2196_v14  ;;  %1703 = vmatprep.mubr.bf16.mxu0 %v936_v20  ;;  %v2277_v20 = vld [vmem:[%s2657_s5 + $0x284] ss:$8 sps:$4 sm:$0xff]   ;;  %v2278_v24 = vld [vmem:[%s2657_s5 + $0x380] ss:$8 sps:$4 sm:$0xff]   ;;  %v938_v14 = vcombine.high %v922_v22, %v922_v22 }
  0x9f   : > { %1744 = vmatprep.mubr.bf16.mxu1 %v940_v25  ;;  %v2322_v25 = vmov 0.0  }
  0xa0   : > { %1674 = vmatpush1.bf16.msra.mxu0 %v2191_v26  ;;  %756 = vst [vmem:[#allocation2] sm:$0xf] %v2322_v25 }
  0xa1   : > { %1715 = vmatpush1.bf16.msra.mxu1 %v2194_v27  ;;  %1675 = vmatprep.subr.bf16.mxu0 %v2199_v28 }
  0xa2   : > { %1716 = vmatprep.subr.bf16.mxu1 %v2202_v29 }
  0xa4   : > { %1676 = vmatpush1.bf16.msra.mxu0 %v2197_v30 }
  0xa5   : > { %1717 = vmatpush1.bf16.msra.mxu1 %v2200_v31  ;;  %1677 = vmatprep.subr.bf16.mxu0 %v2205_v32 }
  0xa6   : > { %1718 = vmatprep.subr.bf16.mxu1 %v2208_v33 }
  0xa8   : > { %1678 = vmatpush1.bf16.msra.mxu0 %v2203_v34  ;;  %v2323_v34 = vmov 1983009808  }
  0xa9   : > { %1719 = vmatpush1.bf16.msra.mxu1 %v2206_v35  ;;  %1679 = vmatprep.subr.bf16.mxu0 %v2211_v36  ;;  %v1757_v35 = vunpack.c.l.s4 %v2323_v34 }
  0xaa   : > { %1720 = vmatprep.subr.bf16.mxu1 %v2214_v37 }
  0xac   : > { %1680 = vmatpush1.bf16.msra.mxu0 %v2209_v38  ;;  %v1758_v38 = vunpack.c.0.s8 %v1757_v35 }
  0xad   : > { %1721 = vmatpush1.bf16.msra.mxu1 %v2212_v39  ;;  %1681 = vmatprep.subr.bf16.mxu0 %v2217_v40 }
  0xae   : > { %1722 = vmatprep.subr.bf16.mxu1 %v2220_v41 }
  0xb0   : > { %1682 = vmatpush1.bf16.msra.mxu0 %v2215_v42 }
  0xb1   : > { %1723 = vmatpush1.bf16.msra.mxu1 %v2218_v43  ;;  %1683 = vmatprep.subr.bf16.mxu0 %v2223_v44  ;;  %v1761_v44 = vsub.s32 %v1758_v38, %v2655_v4 }
  0xb2   : > { %1724 = vmatprep.subr.bf16.mxu1 %v2226_v45 }
  0xb4   : > { %1684 = vmatpush1.bf16.msra.mxu0 %v2221_v46 }
  0xb5   : > { %1725 = vmatpush1.bf16.msra.mxu1 %v2224_v47  ;;  %1685 = vmatprep.subr.bf16.mxu0 %v2229_v48 }
  0xb6   : > { %1726 = vmatprep.subr.bf16.mxu1 %v2232_v49  ;;  %v1774_v49 = vsub.s32 0, %v2655_v4 }
  0xb8   : > { %1686 = vmatpush1.bf16.msra.mxu0 %v2227_v50  ;;  %v1778_v50 = vsub.s32 1, %v2655_v4 }
  0xb9   : > { %1727 = vmatpush1.bf16.msra.mxu1 %v2230_v51  ;;  %1687 = vmatprep.subr.bf16.mxu0 %v2235_v52  ;;  %v1770_v51 = vld [vmem:[%s745_s9] sm:$0x3] }
  0xba   : > { %1728 = vmatprep.subr.bf16.mxu1 %v2238_v53 }
  0xbc   : > { %1688 = vmatpush2.bf16.msra.mxu0 %v2233_v54 }
  0xbd   : > { %1729 = vmatpush2.bf16.msra.mxu1 %v2236_v55  ;;  %1689 = vmatprep.subr.bf16.mxu0 %v2241_v56  ;;  %v758_v55 = vld [vmem:[#allocation2] sm:$0xf] }
  0xbe   : > { %1730 = vmatprep.subr.bf16.mxu1 %v2244_v57  ;;  %v1775_v57 = vrot.slane %v1770_v51, %v1774_v49 }
  0xc0   : > { %1690 = vmatpush2.bf16.msra.mxu0 %v2239_v58  ;;  %v1779_v58 = vrot.slane %v1770_v51, %v1778_v50 }
  0xc1   : > { %1731 = vmatpush2.bf16.msra.mxu1 %v2242_v59  ;;  %1691 = vmatprep.subr.bf16.mxu0 %v2247_v60 }
  0xc2   : > { %1732 = vmatprep.subr.bf16.mxu1 %v2250_v61  ;;  %v1780_v60 = vcombine.low %v1775_v57, %v1779_v58 }
  0xc4   : > { %1692 = vmatpush2.bf16.msra.mxu0 %v2245_v62  ;;  %v1787_v61 = vrot.slane %v1780_v60, %v1761_v44 }
  0xc5   : > { %1733 = vmatpush2.bf16.msra.mxu1 %v2248_v63  ;;  %1693 = vmatprep.subr.bf16.mxu0 %v2253_v0 }
  0xc6   : > { %1734 = vmatprep.subr.bf16.mxu1 %v2256_v1 }
  0xc8   : > { %1694 = vmatpush2.bf16.msra.mxu0 %v2251_v2 }
  0xc9   : > { %1735 = vmatpush2.bf16.msra.mxu1 %v2254_v5  ;;  %1695 = vmatprep.subr.bf16.mxu0 %v2259_v6 }
  0xca   : > { %1736 = vmatprep.subr.bf16.mxu1 %v2262_v7 }
  0xcc   : > { %1696 = vmatpush2.bf16.msra.mxu0 %v2257_v9 }
  0xcd   : > { %1737 = vmatpush2.bf16.msra.mxu1 %v2260_v11  ;;  %1697 = vmatprep.subr.bf16.mxu0 %v2265_v3 }
  0xce   : > { %1738 = vmatprep.subr.bf16.mxu1 %v2268_v12 }
  0xd0   : > { %1698 = vmatpush2.bf16.msra.mxu0 %v2263_v13 }
  0xd1   : > { %1739 = vmatpush2.bf16.msra.mxu1 %v2266_v15  ;;  %1699 = vmatprep.subr.bf16.mxu0 %v2271_v16 }
  0xd2   : > { %1740 = vmatprep.subr.bf16.mxu1 %v2274_v17 }
  0xd4   : > { %1700 = vmatpush2.bf16.msra.mxu0 %v2269_v18 }
  0xd5   : > { %1741 = vmatpush2.bf16.msra.mxu1 %v2272_v19  ;;  %1701 = vmatprep.subr.bf16.mxu0 %v2277_v20 }
  0xd6   : > { %1742 = vmatprep.subr.bf16.mxu1 %v2280_v21 }
  0xd8   : > { %1702 = vmatpush2.bf16.msra.mxu0 %v2275_v23 }
  0xd9   : > { %1743 = vmatpush2.bf16.msra.mxu1 %v2278_v24 }
  0xdb   : > { %1704 = vmatmul.mubr.bf16.vlgmr.msra.gmra.mxu0 %v922_v22 }
  0xdc   : > { %1745 = vmatmul.mubr.bf16.vlgmr.msra.gmra.mxu1 %v938_v14 }
 0x15b   : > { %v1623_v26 = vpop.f32.mrf.mxu0 }
 0x15c   : > { %v1664_v27 = vpop.f32.mrf.mxu1 }
 0x15d   : > { %v1665_v28 = vadd.f32 %v1664_v27, %v1623_v26  ;;  %v1625_v29 = vpop.f32.mrf.mxu0 }
 0x15e   : > { %v1666_v30 = vpop.f32.mrf.mxu1 }
 0x15f   : > { %v1627_v8 = vpop.f32.mrf.mxu0  ;;  %v1667_v39 = vadd.f32 %v1666_v30, %v1625_v29 }
 0x160   : > { %v1668_v31 = vpop.f32.mrf.mxu1 }
 0x161   : > { %v1628_v32 = vpop.f32.mrf.mxu0 }
 0x162   : > { %v1669_v33 = vpop.f32.mrf.mxu1 }
 0x19b   : > { %v1705_v36 = vpop.f32.mrf.mxu0 }
 0x19c   : > { %v1746_v37 = vpop.f32.mrf.mxu1  ;;  %v1706_v40 = vadd.f32 %v1705_v36, %v1665_v28 }
 0x19d   : > { %v1707_v41 = vpop.f32.mrf.mxu0 }
 0x19e   : > { %v1748_v42 = vpop.f32.mrf.mxu1  ;;  %v1708_v43 = vadd.f32 %v1707_v41, %v1667_v39  ;;  %v1747_v47 = vadd.f32 %v1746_v37, %v1706_v40 }
 0x19f   : > { %v1709_v45 = vpop.f32.mrf.mxu0 }
 0x1a0   : > { %v1750_v46 = vpop.f32.mrf.mxu1  ;;  %v1749_v48 = vadd.f32 %v1748_v42, %v1708_v43 }
 0x1a1   : > { %v1710_v52 = vpop.f32.mrf.mxu0 }
 0x1a2   : > { %v1751_v53 = vpop.f32.mrf.mxu1  ;;  %v1755_v54 = vcombine.low %v1747_v47, %v1749_v48 }
 0x1a4   : > { %v1762_v56 = vrot.slane %v1755_v54, %v1761_v44 }
 0x1a6   : > { %v1764_v59 = vadd.f32 %v1762_v56, %v758_v55 }
 0x1a8   : > { %1765 = vst [vmem:[#allocation2] sm:$0xf] %v1764_v59 }
 0x1af   : > { %v1769_v62 = vld [vmem:[#allocation2] sm:$0xf] }
 0x1b0   : > { %v1789_v63 = vadd.f32 %v1787_v61, %v1769_v62 }
 0x1b2   : > { %v1790_v0 = vmax.f32 %v1789_v63, 0.0 }
 0x1b4   : > { %v1798_v1 = vrot.slane %v1790_v0, %v1761_v44 }
 0x1b6   : > { %v1799_v2 = vcombine.high %v1798_v1, %v1798_v1 }
 0x1b8   : > { %v2040_v5 = vpack.c.bf16 %v1799_v2, %v1798_v1 }
 0x1ba   : > { %v1813_v4 = vrot.slane %v2040_v5, %v2664_v10 }
 0x1bc   : > { %2041 = vst.sshfl [vmem:[%s750_s12] sm:$0x5 pattern:$0x73625140] %v1813_v4 }
 0x1bd PF: > { %s13_s16 = sadd.s32 1, %s2319_s16   ;;  %s2843_s12 = smov %s2307_s13 }
 0x1be   : > { %p10_p10 = scmp.ge.s32.totalorder %s13_s16, 4   ;;  %s2844_s13 = smov %s2379_s20 }
 0x1bf   : > { %s2845_s14 = smov %s2315_s15  ;;  %s2846_s15 = smov %s2848_s17 }
 0x1c0   :  { %12 = sbr.rel (!%p10_p10) target bundleno = 3 (0x3), region = 117 }

</bundles_post_ra>
